<compile_context>
chip_gen: v6e
topology: v6e:2x2x1
jax: 0.10.0
libtpu: 0.0.40
codegen_flags: <defaults>
</compile_context>

<pallas_src>
import functools

import jax
import jax.numpy as jnp
from jax import lax
from jax.experimental import pallas as pl
from jax.experimental.pallas import tpu as pltpu


def _round_up(x, m):
    return (x + m - 1) // m * m


def _pick_time_chunk(T, max_chunk=32):
    """Largest divisor of T that is <= max_chunk (T itself if small)."""
    if T <= max_chunk:
        return T
    for c in range(max_chunk, 0, -1):
        if T % c == 0:
            return c
    return 1


def _snn_kernel(psp_ref, wo_ref, out_ref,
                h_spike, h_volt, o_spike, o_volt,
                *, hid_param, out_param, time_chunk,
                batch, hidden_dim, output_dim):
    """One grid step == `time_chunk` SNN timesteps.

    psp_ref : (time_chunk, B_pad, H_pad)  precomputed input projection x_t @ Wh^T
    wo_ref  : (H_pad, O_pad)              output-layer weights (padded, transposed)
    out_ref : (B_pad, O_pad)              accumulated output spikes (grid-resident)
    scratch : hidden/output spike & membrane-voltage state, float32
    """
    hid_vdecay, hid_vth, hid_gwin, _hid_gamp, hid_rate = hid_param
    out_vdecay, out_vth, out_gwin, _out_gamp, out_rate = out_param

    g = pl.program_id(0)

    @pl.when(g == 0)
    def _init():
        h_spike[...] = jnp.zeros_like(h_spike)
        h_volt[...] = jnp.zeros_like(h_volt)
        o_spike[...] = jnp.zeros_like(o_spike)
        o_volt[...] = jnp.zeros_like(o_volt)
        out_ref[...] = jnp.zeros_like(out_ref)

    B_pad, H_pad = h_volt.shape
    _, O_pad = o_volt.shape

    # Validity masks for the padded region: the global max (dynamic threshold)
    # must only see real elements, exactly like torch.max on the unpadded
    # tensor.  Built once per grid step, hoisted out of the time loop.
    hid_mask = (
        (lax.broadcasted_iota(jnp.int32, (B_pad, H_pad), 0) < batch)
        & (lax.broadcasted_iota(jnp.int32, (B_pad, H_pad), 1) < hidden_dim)
    )
    out_mask = (
        (lax.broadcasted_iota(jnp.int32, (B_pad, O_pad), 0) < batch)
        & (lax.broadcasted_iota(jnp.int32, (B_pad, O_pad), 1) < output_dim)
    )
    neg_inf = jnp.float32(-jnp.inf)

    def step(tt, carry):
        psp_t = psp_ref[tt]  # (B_pad, H_pad) — input projection for this timestep

        # ---- hidden LIF cell --------------------------------------------
        hv = h_volt[...] * hid_vdecay * (1.0 - h_spike[...]) + psp_t
        h_scaled = hid_rate * hv
        # global max over the valid region, kept as a (1,1) vreg scalar
        h_max = jnp.max(
            jnp.max(jnp.where(hid_mask, h_scaled, neg_inf), axis=-1, keepdims=True),
            axis=-2, keepdims=True)
        h_dvth = hid_vth * jnp.tanh(hid_gwin * h_max)          # (1, 1)
        h_out = (h_scaled > h_dvth).astype(jnp.float32)
        h_volt[...] = hv
        h_spike[...] = h_out

        # ---- output LIF cell --------------------------------------------
        o_psp = jnp.dot(h_out, wo_ref[...], preferred_element_type=jnp.float32)
        ov = o_volt[...] * out_vdecay * (1.0 - o_spike[...]) + o_psp
        o_scaled = out_rate * ov
        o_max = jnp.max(
            jnp.max(jnp.where(out_mask, o_scaled, neg_inf), axis=-1, keepdims=True),
            axis=-2, keepdims=True)
        o_dvth = out_vth * jnp.tanh(out_gwin * o_max)
        o_out = (o_scaled > o_dvth).astype(jnp.float32)
        o_volt[...] = ov
        o_spike[...] = o_out

        # accumulate output spikes over time
        out_ref[...] += o_out
        return carry

    # Fully unroll short chunks for LLO scheduler visibility; cap unroll depth
    # so very long chunks don't blow up code size.
    lax.fori_loop(0, time_chunk, step, 0, unroll=min(time_chunk, 8))


def snn_network_forward(spike_data, w_hid, w_out, hid_param, out_param,
                        *, time_chunk=None):
    """spike_data: (B, input_dim, T) float32 (or any shape viewable as such)
       w_hid: (hidden_dim, input_dim)   (torch nn.Linear weight layout, no bias)
       w_out: (output_dim, hidden_dim)
    """
    B = spike_data.shape[0]
    T = spike_data.shape[-1]
    hidden_dim, input_dim = w_hid.shape
    output_dim = w_out.shape[0]

    x = spike_data.reshape(B, input_dim, T).astype(jnp.float32)

    # Pad to full (sublane, lane) tiles: lane-dense stores + full MXU tiles.
    B_pad = _round_up(max(B, 8), 8)
    H_pad = _round_up(hidden_dim, 128)
    O_pad = _round_up(output_dim, 128)

    if time_chunk is None:
        time_chunk = _pick_time_chunk(T)
    assert T % time_chunk == 0, "time_chunk must divide T"

    # ---- hoisted, state-independent input projection: one big matmul ------
    # Pad batch *before* the einsum so the result lands directly in the padded
    # (T, B_pad, H_pad) layout (no second copy).  Padded rows/cols are zero.
    x_pad = jnp.zeros((B_pad, input_dim, T), jnp.float32).at[:B].set(x)
    wh_pad = jnp.zeros((input_dim, H_pad), jnp.float32)
    wh_pad = wh_pad.at[:, :hidden_dim].set(jnp.transpose(w_hid).astype(jnp.float32))
    psp_pad = jnp.einsum('bit,ih->tbh', x_pad, wh_pad)           # (T, B_pad, H_pad)

    # Output-layer weights, padded & transposed to (H_pad, O_pad).
    wo_pad = jnp.zeros((H_pad, O_pad), jnp.float32)
    wo_pad = wo_pad.at[:hidden_dim, :output_dim].set(
        jnp.transpose(w_out).astype(jnp.float32))

    kernel = functools.partial(
        _snn_kernel,
        hid_param=tuple(float(p) for p in hid_param),
        out_param=tuple(float(p) for p in out_param),
        time_chunk=time_chunk,
        batch=B, hidden_dim=hidden_dim, output_dim=output_dim,
    )

    out_pad = pl.pallas_call(
        kernel,
        out_shape=jax.ShapeDtypeStruct((B_pad, O_pad), jnp.float32),
        grid_spec=pltpu.PrefetchScalarGridSpec(
            num_scalar_prefetch=0,
            grid=(T // time_chunk,),
            in_specs=[
                pl.BlockSpec((time_chunk, B_pad, H_pad), lambda g: (g, 0, 0)),
                pl.BlockSpec((H_pad, O_pad), lambda g: (0, 0)),
            ],
            out_specs=pl.BlockSpec((B_pad, O_pad), lambda g: (0, 0)),
            scratch_shapes=[
                pltpu.VMEM((B_pad, H_pad), jnp.float32),   # hidden spike
                pltpu.VMEM((B_pad, H_pad), jnp.float32),   # hidden volt
                pltpu.VMEM((B_pad, O_pad), jnp.float32),   # output spike
                pltpu.VMEM((B_pad, O_pad), jnp.float32),   # output volt
            ],
        ),
        compiler_params=pltpu.CompilerParams(
            # Recurrence over time -> strictly sequential grid axis.
            dimension_semantics=("arbitrary",),
        ),
    )(psp_pad, wo_pad)

    return out_pad[:B, :output_dim]


def _reference_forward(spike_data, w_hid, w_out, hid_param, out_param):
    """Pure-JAX reference matching the PyTorch module semantics."""
    B, input_dim, T = spike_data.shape
    hidden_dim = w_hid.shape[0]
    output_dim = w_out.shape[0]
    hv = jnp.zeros((B, hidden_dim), jnp.float32)
    hs = jnp.zeros((B, hidden_dim), jnp.float32)
    ov = jnp.zeros((B, output_dim), jnp.float32)
    os_ = jnp.zeros((B, output_dim), jnp.float32)
    acc = jnp.zeros((B, output_dim), jnp.float32)
    for t in range(T):
        s_in = spike_data[:, :, t]
        hv = hv * hid_param[0] * (1.0 - hs) + s_in @ w_hid.T
        sc = hid_param[4] * hv
        dvth = hid_param[1] * jnp.tanh(hid_param[2] * jnp.max(sc))
        hs = (sc > dvth).astype(jnp.float32)
        ov = ov * out_param[0] * (1.0 - os_) + hs @ w_out.T
        sco = out_param[4] * ov
        dvtho = out_param[1] * jnp.tanh(out_param[2] * jnp.max(sco))
        os_ = (sco > dvtho).astype(jnp.float32)
        acc = acc + os_
    return acc


if __name__ == "__main__":
    # small, module-consistent shapes
    B, input_dim, hidden_dim, output_dim, T = 2, 16, 32, 8, 8

    # LIF params: (vdecay, vth, grad_win(=threshold_adaptation), grad_amp, rate_scale)
    hid_param = (0.5, 0.3, 0.8, 1.0, 2.0)
    out_param = (0.5, 0.3, 0.8, 1.0, 2.0)

    key = jax.random.PRNGKey(0)
    k1, k2, k3 = jax.random.split(key, 3)
    # deterministic synthetic weights (nn.Linear layout: (out_features, in_features), no bias)
    w_hid = jax.random.uniform(k1, (hidden_dim, input_dim), jnp.float32,
                               minval=-1.0 / jnp.sqrt(input_dim),
                               maxval=1.0 / jnp.sqrt(input_dim))
    w_out = jax.random.uniform(k2, (output_dim, hidden_dim), jnp.float32,
                               minval=-1.0 / jnp.sqrt(hidden_dim),
                               maxval=1.0 / jnp.sqrt(hidden_dim))
    # binary spike input, shape (B, input_dim, T)
    spike_data = (jax.random.uniform(k3, (B, input_dim, T)) > 0.5).astype(jnp.float32)

    out = snn_network_forward(spike_data, w_hid, w_out, hid_param, out_param)
    out = jax.block_until_ready(out)

    ref = _reference_forward(spike_data, w_hid, w_out, hid_param, out_param)
    assert out.shape == (B, output_dim)
    assert jnp.allclose(out, ref, atol=1e-5), (out, ref)

    print("KERNEL_OK")
</pallas_src>

<mosaic_0001>
module attributes {stable_mosaic.version = 11 : i64} {
  func.func @_snn_kernel(%arg0: i32, %arg1: memref<8x8x128xf32, #tpu.memory_space<vmem>>, %arg2: memref<128x128xf32, #tpu.memory_space<vmem>>, %arg3: memref<8x128xf32, #tpu.memory_space<vmem>>, %arg4: memref<8x128xf32, #tpu.memory_space<vmem>>, %arg5: memref<8x128xf32, #tpu.memory_space<vmem>>, %arg6: memref<8x128xf32, #tpu.memory_space<vmem>>, %arg7: memref<8x128xf32, #tpu.memory_space<vmem>>) attributes {dimension_semantics = [#tpu.dimension_semantics<arbitrary>], iteration_bounds = array<i64: 1>, scalar_prefetch = 0 : i64, scratch_operands = 4 : i64, tpu.core_type = #tpu.core_type<tc>, window_params = [{transform_indices = @transform_0, window_bounds = array<i64: 8, 8, 128>}, {pipeline_mode = #tpu.pipeline_mode<synchronous>, transform_indices = @transform_1, window_bounds = array<i64: 128, 128>}, {pipeline_mode = #tpu.pipeline_mode<synchronous>, transform_indices = @transform_2, window_bounds = array<i64: 8, 128>}]} {
    %c0_i32 = arith.constant 0 : i32
    %0 = arith.cmpi eq, %arg0, %c0_i32 : i32
    %1 = arith.extui %0 : i1 to i32
    %c0_i32_0 = arith.constant 0 : i32
    %2 = arith.cmpi ne, %1, %c0_i32_0 : i32
    scf.if %2 {
      %cst_316 = arith.constant 0.000000e+00 : f32
      %513 = vector.broadcast %cst_316 : f32 to vector<8x128xf32>
      %c0_317 = arith.constant 0 : index
      %c0_318 = arith.constant 0 : index
      %514 = vector.load %arg4[%c0_317, %c0_318] : memref<8x128xf32, #tpu.memory_space<vmem>>, vector<8x128xf32>
      tpu.vector_store %arg4[%c0_317, %c0_318], %513 {strides = array<i32>} : memref<8x128xf32, #tpu.memory_space<vmem>>, vector<8x128xf32>,
      %cst_319 = arith.constant 0.000000e+00 : f32
      %515 = vector.broadcast %cst_319 : f32 to vector<8x128xf32>
      %c0_320 = arith.constant 0 : index
      %c0_321 = arith.constant 0 : index
      %516 = vector.load %arg5[%c0_320, %c0_321] : memref<8x128xf32, #tpu.memory_space<vmem>>, vector<8x128xf32>
      tpu.vector_store %arg5[%c0_320, %c0_321], %515 {strides = array<i32>} : memref<8x128xf32, #tpu.memory_space<vmem>>, vector<8x128xf32>,
      %cst_322 = arith.constant 0.000000e+00 : f32
      %517 = vector.broadcast %cst_322 : f32 to vector<8x128xf32>
      %c0_323 = arith.constant 0 : index
      %c0_324 = arith.constant 0 : index
      %518 = vector.load %arg6[%c0_323, %c0_324] : memref<8x128xf32, #tpu.memory_space<vmem>>, vector<8x128xf32>
      tpu.vector_store %arg6[%c0_323, %c0_324], %517 {strides = array<i32>} : memref<8x128xf32, #tpu.memory_space<vmem>>, vector<8x128xf32>,
      %cst_325 = arith.constant 0.000000e+00 : f32
      %519 = vector.broadcast %cst_325 : f32 to vector<8x128xf32>
      %c0_326 = arith.constant 0 : index
      %c0_327 = arith.constant 0 : index
      %520 = vector.load %arg7[%c0_326, %c0_327] : memref<8x128xf32, #tpu.memory_space<vmem>>, vector<8x128xf32>
      tpu.vector_store %arg7[%c0_326, %c0_327], %519 {strides = array<i32>} : memref<8x128xf32, #tpu.memory_space<vmem>>, vector<8x128xf32>,
      %cst_328 = arith.constant 0.000000e+00 : f32
      %521 = vector.broadcast %cst_328 : f32 to vector<8x128xf32>
      %c0_329 = arith.constant 0 : index
      %c0_330 = arith.constant 0 : index
      %522 = vector.load %arg3[%c0_329, %c0_330] : memref<8x128xf32, #tpu.memory_space<vmem>>, vector<8x128xf32>
      tpu.vector_store %arg3[%c0_329, %c0_330], %521 {strides = array<i32>} : memref<8x128xf32, #tpu.memory_space<vmem>>, vector<8x128xf32>,
    } else {
    }
    %3 = tpu.iota {dimensions = array<i32: 0>} : vector<8x128xi32>
    %c2_i32 = arith.constant 2 : i32
    %4 = vector.broadcast %c2_i32 : i32 to vector<8x128xi32>
    %5 = arith.cmpi slt, %3, %4 : vector<8x128xi32>
    %6 = tpu.iota {dimensions = array<i32: 1>} : vector<8x128xi32>
    %c32_i32 = arith.constant 32 : i32
    %7 = vector.broadcast %c32_i32 : i32 to vector<8x128xi32>
    %8 = arith.cmpi slt, %6, %7 : vector<8x128xi32>
    %9 = arith.andi %5, %8 : vector<8x128xi1>
    %10 = tpu.iota {dimensions = array<i32: 0>} : vector<8x128xi32>
    %c2_i32_1 = arith.constant 2 : i32
    %11 = vector.broadcast %c2_i32_1 : i32 to vector<8x128xi32>
    %12 = arith.cmpi slt, %10, %11 : vector<8x128xi32>
    %13 = tpu.iota {dimensions = array<i32: 1>} : vector<8x128xi32>
    %c8_i32 = arith.constant 8 : i32
    %14 = vector.broadcast %c8_i32 : i32 to vector<8x128xi32>
    %15 = arith.cmpi slt, %13, %14 : vector<8x128xi32>
    %16 = arith.andi %12, %15 : vector<8x128xi1>
    %cst = arith.constant 0xFF800000 : f32
    %c0_i32_2 = arith.constant 0 : i32
    %17 = arith.index_cast %c0_i32_2 : i32 to index
    %c0 = arith.constant 0 : index
    %c0_3 = arith.constant 0 : index
    %18 = vector.load %arg1[%17, %c0, %c0_3] : memref<8x8x128xf32, #tpu.memory_space<vmem>>, vector<1x8x128xf32>
    %19 = vector.shape_cast %18 : vector<1x8x128xf32> to vector<8x128xf32>
    %c0_4 = arith.constant 0 : index
    %c0_5 = arith.constant 0 : index
    %20 = vector.load %arg5[%c0_4, %c0_5] : memref<8x128xf32, #tpu.memory_space<vmem>>, vector<8x128xf32>
    %cst_6 = arith.constant 5.000000e-01 : f32
    %21 = vector.broadcast %cst_6 : f32 to vector<8x128xf32>
    %22 = arith.mulf %20, %21 : vector<8x128xf32>
    %c0_7 = arith.constant 0 : index
    %c0_8 = arith.constant 0 : index
    %23 = vector.load %arg4[%c0_7, %c0_8] : memref<8x128xf32, #tpu.memory_space<vmem>>, vector<8x128xf32>
    %cst_9 = arith.constant 1.000000e+00 : f32
    %24 = vector.broadcast %cst_9 : f32 to vector<8x128xf32>
    %25 = arith.subf %24, %23 : vector<8x128xf32>
    %26 = arith.mulf %22, %25 : vector<8x128xf32>
    %27 = arith.addf %26, %19 : vector<8x128xf32>
    %cst_10 = arith.constant 2.000000e+00 : f32
    %28 = vector.broadcast %cst_10 : f32 to vector<8x128xf32>
    %29 = arith.mulf %28, %27 : vector<8x128xf32>
    %30 = vector.broadcast %cst : f32 to vector<8x128xf32>
    %31 = arith.select %9, %29, %30 : vector<8x128xi1>, vector<8x128xf32>
    %cst_11 = arith.constant dense<0xFF800000> : vector<8xf32>
    %32 = vector.multi_reduction <maximumf>, %31, %cst_11 [1] : vector<8x128xf32> to vector<8xf32>
    %33 = vector.shape_cast %32 : vector<8xf32> to vector<8x1xf32>
    %cst_12 = arith.constant dense<0xFF800000> : vector<1xf32>
    %34 = vector.multi_reduction <maximumf>, %33, %cst_12 [0] : vector<8x1xf32> to vector<1xf32>
    %35 = vector.shape_cast %34 : vector<1xf32> to vector<1x1xf32>
    %cst_13 = arith.constant 8.000000e-01 : f32
    %36 = vector.broadcast %cst_13 : f32 to vector<1x1xf32>
    %37 = arith.mulf %36, %35 : vector<1x1xf32>
    %38 = math.tanh %37 : vector<1x1xf32>
    %cst_14 = arith.constant 3.000000e-01 : f32
    %39 = vector.broadcast %cst_14 : f32 to vector<1x1xf32>
    %40 = arith.mulf %39, %38 : vector<1x1xf32>
    %41 = vector.broadcast %40 : vector<1x1xf32> to vector<8x128xf32>
    %42 = arith.cmpf ogt, %29, %41 : vector<8x128xf32>
    %43 = arith.extui %42 : vector<8x128xi1> to vector<8x128xi32>
    %44 = arith.sitofp %43 : vector<8x128xi32> to vector<8x128xf32>
    %c0_15 = arith.constant 0 : index
    %c0_16 = arith.constant 0 : index
    %45 = vector.load %arg5[%c0_15, %c0_16] : memref<8x128xf32, #tpu.memory_space<vmem>>, vector<8x128xf32>
    tpu.vector_store %arg5[%c0_15, %c0_16], %27 {strides = array<i32>} : memref<8x128xf32, #tpu.memory_space<vmem>>, vector<8x128xf32>,
    %c0_17 = arith.constant 0 : index
    %c0_18 = arith.constant 0 : index
    %46 = vector.load %arg4[%c0_17, %c0_18] : memref<8x128xf32, #tpu.memory_space<vmem>>, vector<8x128xf32>
    tpu.vector_store %arg4[%c0_17, %c0_18], %44 {strides = array<i32>} : memref<8x128xf32, #tpu.memory_space<vmem>>, vector<8x128xf32>,
    %c0_19 = arith.constant 0 : index
    %c0_20 = arith.constant 0 : index
    %47 = vector.load %arg2[%c0_19, %c0_20] : memref<128x128xf32, #tpu.memory_space<vmem>>, vector<128x128xf32>
    %cst_21 = arith.constant dense<0.000000e+00> : vector<8x128xf32>
    %48 = tpu.matmul %44, %47, %cst_21 {dimension_numbers = #tpu.dot_dimension_numbers<[1], [0], [0], [1], [0, 0, 1, 1], [], []>} : vector<8x128xf32>, vector<128x128xf32>, vector<8x128xf32> -> vector<8x128xf32>
    %c0_22 = arith.constant 0 : index
    %c0_23 = arith.constant 0 : index
    %49 = vector.load %arg7[%c0_22, %c0_23] : memref<8x128xf32, #tpu.memory_space<vmem>>, vector<8x128xf32>
    %cst_24 = arith.constant 5.000000e-01 : f32
    %50 = vector.broadcast %cst_24 : f32 to vector<8x128xf32>
    %51 = arith.mulf %49, %50 : vector<8x128xf32>
    %c0_25 = arith.constant 0 : index
    %c0_26 = arith.constant 0 : index
    %52 = vector.load %arg6[%c0_25, %c0_26] : memref<8x128xf32, #tpu.memory_space<vmem>>, vector<8x128xf32>
    %cst_27 = arith.constant 1.000000e+00 : f32
    %53 = vector.broadcast %cst_27 : f32 to vector<8x128xf32>
    %54 = arith.subf %53, %52 : vector<8x128xf32>
    %55 = arith.mulf %51, %54 : vector<8x128xf32>
    %56 = arith.addf %55, %48 : vector<8x128xf32>
    %cst_28 = arith.constant 2.000000e+00 : f32
    %57 = vector.broadcast %cst_28 : f32 to vector<8x128xf32>
    %58 = arith.mulf %57, %56 : vector<8x128xf32>
    %59 = vector.broadcast %cst : f32 to vector<8x128xf32>
    %60 = arith.select %16, %58, %59 : vector<8x128xi1>, vector<8x128xf32>
    %cst_29 = arith.constant dense<0xFF800000> : vector<8xf32>
    %61 = vector.multi_reduction <maximumf>, %60, %cst_29 [1] : vector<8x128xf32> to vector<8xf32>
    %62 = vector.shape_cast %61 : vector<8xf32> to vector<8x1xf32>
    %cst_30 = arith.constant dense<0xFF800000> : vector<1xf32>
    %63 = vector.multi_reduction <maximumf>, %62, %cst_30 [0] : vector<8x1xf32> to vector<1xf32>
    %64 = vector.shape_cast %63 : vector<1xf32> to vector<1x1xf32>
    %cst_31 = arith.constant 8.000000e-01 : f32
    %65 = vector.broadcast %cst_31 : f32 to vector<1x1xf32>
    %66 = arith.mulf %65, %64 : vector<1x1xf32>
    %67 = math.tanh %66 : vector<1x1xf32>
    %cst_32 = arith.constant 3.000000e-01 : f32
    %68 = vector.broadcast %cst_32 : f32 to vector<1x1xf32>
    %69 = arith.mulf %68, %67 : vector<1x1xf32>
    %70 = vector.broadcast %69 : vector<1x1xf32> to vector<8x128xf32>
    %71 = arith.cmpf ogt, %58, %70 : vector<8x128xf32>
    %72 = arith.extui %71 : vector<8x128xi1> to vector<8x128xi32>
    %73 = arith.sitofp %72 : vector<8x128xi32> to vector<8x128xf32>
    %c0_33 = arith.constant 0 : index
    %c0_34 = arith.constant 0 : index
    %74 = vector.load %arg7[%c0_33, %c0_34] : memref<8x128xf32, #tpu.memory_space<vmem>>, vector<8x128xf32>
    tpu.vector_store %arg7[%c0_33, %c0_34], %56 {strides = array<i32>} : memref<8x128xf32, #tpu.memory_space<vmem>>, vector<8x128xf32>,
    %c0_35 = arith.constant 0 : index
    %c0_36 = arith.constant 0 : index
    %75 = vector.load %arg6[%c0_35, %c0_36] : memref<8x128xf32, #tpu.memory_space<vmem>>, vector<8x128xf32>
    tpu.vector_store %arg6[%c0_35, %c0_36], %73 {strides = array<i32>} : memref<8x128xf32, #tpu.memory_space<vmem>>, vector<8x128xf32>,
    %c0_37 = arith.constant 0 : index
    %c0_38 = arith.constant 0 : index
    %76 = vector.load %arg3[%c0_37, %c0_38] : memref<8x128xf32, #tpu.memory_space<vmem>>, vector<8x128xf32>
    %77 = arith.addf %76, %73 : vector<8x128xf32>
    %c0_39 = arith.constant 0 : index
    %c0_40 = arith.constant 0 : index
    %78 = vector.load %arg3[%c0_39, %c0_40] : memref<8x128xf32, #tpu.memory_space<vmem>>, vector<8x128xf32>
    tpu.vector_store %arg3[%c0_39, %c0_40], %77 {strides = array<i32>} : memref<8x128xf32, #tpu.memory_space<vmem>>, vector<8x128xf32>,
    %c1_i32 = arith.constant 1 : i32
    %79 = arith.index_cast %c1_i32 : i32 to index
    %c0_41 = arith.constant 0 : index
    %c0_42 = arith.constant 0 : index
    %80 = vector.load %arg1[%79, %c0_41, %c0_42] : memref<8x8x128xf32, #tpu.memory_space<vmem>>, vector<1x8x128xf32>
    %81 = vector.shape_cast %80 : vector<1x8x128xf32> to vector<8x128xf32>
    %c0_43 = arith.constant 0 : index
    %c0_44 = arith.constant 0 : index
    %82 = vector.load %arg5[%c0_43, %c0_44] : memref<8x128xf32, #tpu.memory_space<vmem>>, vector<8x128xf32>
    %cst_45 = arith.constant 5.000000e-01 : f32
    %83 = vector.broadcast %cst_45 : f32 to vector<8x128xf32>
    %84 = arith.mulf %82, %83 : vector<8x128xf32>
    %c0_46 = arith.constant 0 : index
    %c0_47 = arith.constant 0 : index
    %85 = vector.load %arg4[%c0_46, %c0_47] : memref<8x128xf32, #tpu.memory_space<vmem>>, vector<8x128xf32>
    %cst_48 = arith.constant 1.000000e+00 : f32
    %86 = vector.broadcast %cst_48 : f32 to vector<8x128xf32>
    %87 = arith.subf %86, %85 : vector<8x128xf32>
    %88 = arith.mulf %84, %87 : vector<8x128xf32>
    %89 = arith.addf %88, %81 : vector<8x128xf32>
    %cst_49 = arith.constant 2.000000e+00 : f32
    %90 = vector.broadcast %cst_49 : f32 to vector<8x128xf32>
    %91 = arith.mulf %90, %89 : vector<8x128xf32>
    %92 = vector.broadcast %cst : f32 to vector<8x128xf32>
    %93 = arith.select %9, %91, %92 : vector<8x128xi1>, vector<8x128xf32>
    %cst_50 = arith.constant dense<0xFF800000> : vector<8xf32>
    %94 = vector.multi_reduction <maximumf>, %93, %cst_50 [1] : vector<8x128xf32> to vector<8xf32>
    %95 = vector.shape_cast %94 : vector<8xf32> to vector<8x1xf32>
    %cst_51 = arith.constant dense<0xFF800000> : vector<1xf32>
    %96 = vector.multi_reduction <maximumf>, %95, %cst_51 [0] : vector<8x1xf32> to vector<1xf32>
    %97 = vector.shape_cast %96 : vector<1xf32> to vector<1x1xf32>
    %cst_52 = arith.constant 8.000000e-01 : f32
    %98 = vector.broadcast %cst_52 : f32 to vector<1x1xf32>
    %99 = arith.mulf %98, %97 : vector<1x1xf32>
    %100 = math.tanh %99 : vector<1x1xf32>
    %cst_53 = arith.constant 3.000000e-01 : f32
    %101 = vector.broadcast %cst_53 : f32 to vector<1x1xf32>
    %102 = arith.mulf %101, %100 : vector<1x1xf32>
    %103 = vector.broadcast %102 : vector<1x1xf32> to vector<8x128xf32>
    %104 = arith.cmpf ogt, %91, %103 : vector<8x128xf32>
    %105 = arith.extui %104 : vector<8x128xi1> to vector<8x128xi32>
    %106 = arith.sitofp %105 : vector<8x128xi32> to vector<8x128xf32>
    %c0_54 = arith.constant 0 : index
    %c0_55 = arith.constant 0 : index
    %107 = vector.load %arg5[%c0_54, %c0_55] : memref<8x128xf32, #tpu.memory_space<vmem>>, vector<8x128xf32>
    tpu.vector_store %arg5[%c0_54, %c0_55], %89 {strides = array<i32>} : memref<8x128xf32, #tpu.memory_space<vmem>>, vector<8x128xf32>,
    %c0_56 = arith.constant 0 : index
    %c0_57 = arith.constant 0 : index
    %108 = vector.load %arg4[%c0_56, %c0_57] : memref<8x128xf32, #tpu.memory_space<vmem>>, vector<8x128xf32>
    tpu.vector_store %arg4[%c0_56, %c0_57], %106 {strides = array<i32>} : memref<8x128xf32, #tpu.memory_space<vmem>>, vector<8x128xf32>,
    %c0_58 = arith.constant 0 : index
    %c0_59 = arith.constant 0 : index
    %109 = vector.load %arg2[%c0_58, %c0_59] : memref<128x128xf32, #tpu.memory_space<vmem>>, vector<128x128xf32>
    %cst_60 = arith.constant dense<0.000000e+00> : vector<8x128xf32>
    %110 = tpu.matmul %106, %109, %cst_60 {dimension_numbers = #tpu.dot_dimension_numbers<[1], [0], [0], [1], [0, 0, 1, 1], [], []>} : vector<8x128xf32>, vector<128x128xf32>, vector<8x128xf32> -> vector<8x128xf32>
    %c0_61 = arith.constant 0 : index
    %c0_62 = arith.constant 0 : index
    %111 = vector.load %arg7[%c0_61, %c0_62] : memref<8x128xf32, #tpu.memory_space<vmem>>, vector<8x128xf32>
    %cst_63 = arith.constant 5.000000e-01 : f32
    %112 = vector.broadcast %cst_63 : f32 to vector<8x128xf32>
    %113 = arith.mulf %111, %112 : vector<8x128xf32>
    %c0_64 = arith.constant 0 : index
    %c0_65 = arith.constant 0 : index
    %114 = vector.load %arg6[%c0_64, %c0_65] : memref<8x128xf32, #tpu.memory_space<vmem>>, vector<8x128xf32>
    %cst_66 = arith.constant 1.000000e+00 : f32
    %115 = vector.broadcast %cst_66 : f32 to vector<8x128xf32>
    %116 = arith.subf %115, %114 : vector<8x128xf32>
    %117 = arith.mulf %113, %116 : vector<8x128xf32>
    %118 = arith.addf %117, %110 : vector<8x128xf32>
    %cst_67 = arith.constant 2.000000e+00 : f32
    %119 = vector.broadcast %cst_67 : f32 to vector<8x128xf32>
    %120 = arith.mulf %119, %118 : vector<8x128xf32>
    %121 = vector.broadcast %cst : f32 to vector<8x128xf32>
    %122 = arith.select %16, %120, %121 : vector<8x128xi1>, vector<8x128xf32>
    %cst_68 = arith.constant dense<0xFF800000> : vector<8xf32>
    %123 = vector.multi_reduction <maximumf>, %122, %cst_68 [1] : vector<8x128xf32> to vector<8xf32>
    %124 = vector.shape_cast %123 : vector<8xf32> to vector<8x1xf32>
    %cst_69 = arith.constant dense<0xFF800000> : vector<1xf32>
    %125 = vector.multi_reduction <maximumf>, %124, %cst_69 [0] : vector<8x1xf32> to vector<1xf32>
    %126 = vector.shape_cast %125 : vector<1xf32> to vector<1x1xf32>
    %cst_70 = arith.constant 8.000000e-01 : f32
    %127 = vector.broadcast %cst_70 : f32 to vector<1x1xf32>
    %128 = arith.mulf %127, %126 : vector<1x1xf32>
    %129 = math.tanh %128 : vector<1x1xf32>
    %cst_71 = arith.constant 3.000000e-01 : f32
    %130 = vector.broadcast %cst_71 : f32 to vector<1x1xf32>
    %131 = arith.mulf %130, %129 : vector<1x1xf32>
    %132 = vector.broadcast %131 : vector<1x1xf32> to vector<8x128xf32>
    %133 = arith.cmpf ogt, %120, %132 : vector<8x128xf32>
    %134 = arith.extui %133 : vector<8x128xi1> to vector<8x128xi32>
    %135 = arith.sitofp %134 : vector<8x128xi32> to vector<8x128xf32>
    %c0_72 = arith.constant 0 : index
    %c0_73 = arith.constant 0 : index
    %136 = vector.load %arg7[%c0_72, %c0_73] : memref<8x128xf32, #tpu.memory_space<vmem>>, vector<8x128xf32>
    tpu.vector_store %arg7[%c0_72, %c0_73], %118 {strides = array<i32>} : memref<8x128xf32, #tpu.memory_space<vmem>>, vector<8x128xf32>,
    %c0_74 = arith.constant 0 : index
    %c0_75 = arith.constant 0 : index
    %137 = vector.load %arg6[%c0_74, %c0_75] : memref<8x128xf32, #tpu.memory_space<vmem>>, vector<8x128xf32>
    tpu.vector_store %arg6[%c0_74, %c0_75], %135 {strides = array<i32>} : memref<8x128xf32, #tpu.memory_space<vmem>>, vector<8x128xf32>,
    %c0_76 = arith.constant 0 : index
    %c0_77 = arith.constant 0 : index
    %138 = vector.load %arg3[%c0_76, %c0_77] : memref<8x128xf32, #tpu.memory_space<vmem>>, vector<8x128xf32>
    %139 = arith.addf %138, %135 : vector<8x128xf32>
    %c0_78 = arith.constant 0 : index
    %c0_79 = arith.constant 0 : index
    %140 = vector.load %arg3[%c0_78, %c0_79] : memref<8x128xf32, #tpu.memory_space<vmem>>, vector<8x128xf32>
    tpu.vector_store %arg3[%c0_78, %c0_79], %139 {strides = array<i32>} : memref<8x128xf32, #tpu.memory_space<vmem>>, vector<8x128xf32>,
    %c2_i32_80 = arith.constant 2 : i32
    %141 = arith.index_cast %c2_i32_80 : i32 to index
    %c0_81 = arith.constant 0 : index
    %c0_82 = arith.constant 0 : index
    %142 = vector.load %arg1[%141, %c0_81, %c0_82] : memref<8x8x128xf32, #tpu.memory_space<vmem>>, vector<1x8x128xf32>
    %143 = vector.shape_cast %142 : vector<1x8x128xf32> to vector<8x128xf32>
    %c0_83 = arith.constant 0 : index
    %c0_84 = arith.constant 0 : index
    %144 = vector.load %arg5[%c0_83, %c0_84] : memref<8x128xf32, #tpu.memory_space<vmem>>, vector<8x128xf32>
    %cst_85 = arith.constant 5.000000e-01 : f32
    %145 = vector.broadcast %cst_85 : f32 to vector<8x128xf32>
    %146 = arith.mulf %144, %145 : vector<8x128xf32>
    %c0_86 = arith.constant 0 : index
    %c0_87 = arith.constant 0 : index
    %147 = vector.load %arg4[%c0_86, %c0_87] : memref<8x128xf32, #tpu.memory_space<vmem>>, vector<8x128xf32>
    %cst_88 = arith.constant 1.000000e+00 : f32
    %148 = vector.broadcast %cst_88 : f32 to vector<8x128xf32>
    %149 = arith.subf %148, %147 : vector<8x128xf32>
    %150 = arith.mulf %146, %149 : vector<8x128xf32>
    %151 = arith.addf %150, %143 : vector<8x128xf32>
    %cst_89 = arith.constant 2.000000e+00 : f32
    %152 = vector.broadcast %cst_89 : f32 to vector<8x128xf32>
    %153 = arith.mulf %152, %151 : vector<8x128xf32>
    %154 = vector.broadcast %cst : f32 to vector<8x128xf32>
    %155 = arith.select %9, %153, %154 : vector<8x128xi1>, vector<8x128xf32>
    %cst_90 = arith.constant dense<0xFF800000> : vector<8xf32>
    %156 = vector.multi_reduction <maximumf>, %155, %cst_90 [1] : vector<8x128xf32> to vector<8xf32>
    %157 = vector.shape_cast %156 : vector<8xf32> to vector<8x1xf32>
    %cst_91 = arith.constant dense<0xFF800000> : vector<1xf32>
    %158 = vector.multi_reduction <maximumf>, %157, %cst_91 [0] : vector<8x1xf32> to vector<1xf32>
    %159 = vector.shape_cast %158 : vector<1xf32> to vector<1x1xf32>
    %cst_92 = arith.constant 8.000000e-01 : f32
    %160 = vector.broadcast %cst_92 : f32 to vector<1x1xf32>
    %161 = arith.mulf %160, %159 : vector<1x1xf32>
    %162 = math.tanh %161 : vector<1x1xf32>
    %cst_93 = arith.constant 3.000000e-01 : f32
    %163 = vector.broadcast %cst_93 : f32 to vector<1x1xf32>
    %164 = arith.mulf %163, %162 : vector<1x1xf32>
    %165 = vector.broadcast %164 : vector<1x1xf32> to vector<8x128xf32>
    %166 = arith.cmpf ogt, %153, %165 : vector<8x128xf32>
    %167 = arith.extui %166 : vector<8x128xi1> to vector<8x128xi32>
    %168 = arith.sitofp %167 : vector<8x128xi32> to vector<8x128xf32>
    %c0_94 = arith.constant 0 : index
    %c0_95 = arith.constant 0 : index
    %169 = vector.load %arg5[%c0_94, %c0_95] : memref<8x128xf32, #tpu.memory_space<vmem>>, vector<8x128xf32>
    tpu.vector_store %arg5[%c0_94, %c0_95], %151 {strides = array<i32>} : memref<8x128xf32, #tpu.memory_space<vmem>>, vector<8x128xf32>,
    %c0_96 = arith.constant 0 : index
    %c0_97 = arith.constant 0 : index
    %170 = vector.load %arg4[%c0_96, %c0_97] : memref<8x128xf32, #tpu.memory_space<vmem>>, vector<8x128xf32>
    tpu.vector_store %arg4[%c0_96, %c0_97], %168 {strides = array<i32>} : memref<8x128xf32, #tpu.memory_space<vmem>>, vector<8x128xf32>,
    %c0_98 = arith.constant 0 : index
    %c0_99 = arith.constant 0 : index
    %171 = vector.load %arg2[%c0_98, %c0_99] : memref<128x128xf32, #tpu.memory_space<vmem>>, vector<128x128xf32>
    %cst_100 = arith.constant dense<0.000000e+00> : vector<8x128xf32>
    %172 = tpu.matmul %168, %171, %cst_100 {dimension_numbers = #tpu.dot_dimension_numbers<[1], [0], [0], [1], [0, 0, 1, 1], [], []>} : vector<8x128xf32>, vector<128x128xf32>, vector<8x128xf32> -> vector<8x128xf32>
    %c0_101 = arith.constant 0 : index
    %c0_102 = arith.constant 0 : index
    %173 = vector.load %arg7[%c0_101, %c0_102] : memref<8x128xf32, #tpu.memory_space<vmem>>, vector<8x128xf32>
    %cst_103 = arith.constant 5.000000e-01 : f32
    %174 = vector.broadcast %cst_103 : f32 to vector<8x128xf32>
    %175 = arith.mulf %173, %174 : vector<8x128xf32>
    %c0_104 = arith.constant 0 : index
    %c0_105 = arith.constant 0 : index
    %176 = vector.load %arg6[%c0_104, %c0_105] : memref<8x128xf32, #tpu.memory_space<vmem>>, vector<8x128xf32>
    %cst_106 = arith.constant 1.000000e+00 : f32
    %177 = vector.broadcast %cst_106 : f32 to vector<8x128xf32>
    %178 = arith.subf %177, %176 : vector<8x128xf32>
    %179 = arith.mulf %175, %178 : vector<8x128xf32>
    %180 = arith.addf %179, %172 : vector<8x128xf32>
    %cst_107 = arith.constant 2.000000e+00 : f32
    %181 = vector.broadcast %cst_107 : f32 to vector<8x128xf32>
    %182 = arith.mulf %181, %180 : vector<8x128xf32>
    %183 = vector.broadcast %cst : f32 to vector<8x128xf32>
    %184 = arith.select %16, %182, %183 : vector<8x128xi1>, vector<8x128xf32>
    %cst_108 = arith.constant dense<0xFF800000> : vector<8xf32>
    %185 = vector.multi_reduction <maximumf>, %184, %cst_108 [1] : vector<8x128xf32> to vector<8xf32>
    %186 = vector.shape_cast %185 : vector<8xf32> to vector<8x1xf32>
    %cst_109 = arith.constant dense<0xFF800000> : vector<1xf32>
    %187 = vector.multi_reduction <maximumf>, %186, %cst_109 [0] : vector<8x1xf32> to vector<1xf32>
    %188 = vector.shape_cast %187 : vector<1xf32> to vector<1x1xf32>
    %cst_110 = arith.constant 8.000000e-01 : f32
    %189 = vector.broadcast %cst_110 : f32 to vector<1x1xf32>
    %190 = arith.mulf %189, %188 : vector<1x1xf32>
    %191 = math.tanh %190 : vector<1x1xf32>
    %cst_111 = arith.constant 3.000000e-01 : f32
    %192 = vector.broadcast %cst_111 : f32 to vector<1x1xf32>
    %193 = arith.mulf %192, %191 : vector<1x1xf32>
    %194 = vector.broadcast %193 : vector<1x1xf32> to vector<8x128xf32>
    %195 = arith.cmpf ogt, %182, %194 : vector<8x128xf32>
    %196 = arith.extui %195 : vector<8x128xi1> to vector<8x128xi32>
    %197 = arith.sitofp %196 : vector<8x128xi32> to vector<8x128xf32>
    %c0_112 = arith.constant 0 : index
    %c0_113 = arith.constant 0 : index
    %198 = vector.load %arg7[%c0_112, %c0_113] : memref<8x128xf32, #tpu.memory_space<vmem>>, vector<8x128xf32>
    tpu.vector_store %arg7[%c0_112, %c0_113], %180 {strides = array<i32>} : memref<8x128xf32, #tpu.memory_space<vmem>>, vector<8x128xf32>,
    %c0_114 = arith.constant 0 : index
    %c0_115 = arith.constant 0 : index
    %199 = vector.load %arg6[%c0_114, %c0_115] : memref<8x128xf32, #tpu.memory_space<vmem>>, vector<8x128xf32>
    tpu.vector_store %arg6[%c0_114, %c0_115], %197 {strides = array<i32>} : memref<8x128xf32, #tpu.memory_space<vmem>>, vector<8x128xf32>,
    %c0_116 = arith.constant 0 : index
    %c0_117 = arith.constant 0 : index
    %200 = vector.load %arg3[%c0_116, %c0_117] : memref<8x128xf32, #tpu.memory_space<vmem>>, vector<8x128xf32>
    %201 = arith.addf %200, %197 : vector<8x128xf32>
    %c0_118 = arith.constant 0 : index
    %c0_119 = arith.constant 0 : index
    %202 = vector.load %arg3[%c0_118, %c0_119] : memref<8x128xf32, #tpu.memory_space<vmem>>, vector<8x128xf32>
    tpu.vector_store %arg3[%c0_118, %c0_119], %201 {strides = array<i32>} : memref<8x128xf32, #tpu.memory_space<vmem>>, vector<8x128xf32>,
    %c3_i32 = arith.constant 3 : i32
    %203 = arith.index_cast %c3_i32 : i32 to index
    %c0_120 = arith.constant 0 : index
    %c0_121 = arith.constant 0 : index
    %204 = vector.load %arg1[%203, %c0_120, %c0_121] : memref<8x8x128xf32, #tpu.memory_space<vmem>>, vector<1x8x128xf32>
    %205 = vector.shape_cast %204 : vector<1x8x128xf32> to vector<8x128xf32>
    %c0_122 = arith.constant 0 : index
    %c0_123 = arith.constant 0 : index
    %206 = vector.load %arg5[%c0_122, %c0_123] : memref<8x128xf32, #tpu.memory_space<vmem>>, vector<8x128xf32>
    %cst_124 = arith.constant 5.000000e-01 : f32
    %207 = vector.broadcast %cst_124 : f32 to vector<8x128xf32>
    %208 = arith.mulf %206, %207 : vector<8x128xf32>
    %c0_125 = arith.constant 0 : index
    %c0_126 = arith.constant 0 : index
    %209 = vector.load %arg4[%c0_125, %c0_126] : memref<8x128xf32, #tpu.memory_space<vmem>>, vector<8x128xf32>
    %cst_127 = arith.constant 1.000000e+00 : f32
    %210 = vector.broadcast %cst_127 : f32 to vector<8x128xf32>
    %211 = arith.subf %210, %209 : vector<8x128xf32>
    %212 = arith.mulf %208, %211 : vector<8x128xf32>
    %213 = arith.addf %212, %205 : vector<8x128xf32>
    %cst_128 = arith.constant 2.000000e+00 : f32
    %214 = vector.broadcast %cst_128 : f32 to vector<8x128xf32>
    %215 = arith.mulf %214, %213 : vector<8x128xf32>
    %216 = vector.broadcast %cst : f32 to vector<8x128xf32>
    %217 = arith.select %9, %215, %216 : vector<8x128xi1>, vector<8x128xf32>
    %cst_129 = arith.constant dense<0xFF800000> : vector<8xf32>
    %218 = vector.multi_reduction <maximumf>, %217, %cst_129 [1] : vector<8x128xf32> to vector<8xf32>
    %219 = vector.shape_cast %218 : vector<8xf32> to vector<8x1xf32>
    %cst_130 = arith.constant dense<0xFF800000> : vector<1xf32>
    %220 = vector.multi_reduction <maximumf>, %219, %cst_130 [0] : vector<8x1xf32> to vector<1xf32>
    %221 = vector.shape_cast %220 : vector<1xf32> to vector<1x1xf32>
    %cst_131 = arith.constant 8.000000e-01 : f32
    %222 = vector.broadcast %cst_131 : f32 to vector<1x1xf32>
    %223 = arith.mulf %222, %221 : vector<1x1xf32>
    %224 = math.tanh %223 : vector<1x1xf32>
    %cst_132 = arith.constant 3.000000e-01 : f32
    %225 = vector.broadcast %cst_132 : f32 to vector<1x1xf32>
    %226 = arith.mulf %225, %224 : vector<1x1xf32>
    %227 = vector.broadcast %226 : vector<1x1xf32> to vector<8x128xf32>
    %228 = arith.cmpf ogt, %215, %227 : vector<8x128xf32>
    %229 = arith.extui %228 : vector<8x128xi1> to vector<8x128xi32>
    %230 = arith.sitofp %229 : vector<8x128xi32> to vector<8x128xf32>
    %c0_133 = arith.constant 0 : index
    %c0_134 = arith.constant 0 : index
    %231 = vector.load %arg5[%c0_133, %c0_134] : memref<8x128xf32, #tpu.memory_space<vmem>>, vector<8x128xf32>
    tpu.vector_store %arg5[%c0_133, %c0_134], %213 {strides = array<i32>} : memref<8x128xf32, #tpu.memory_space<vmem>>, vector<8x128xf32>,
    %c0_135 = arith.constant 0 : index
    %c0_136 = arith.constant 0 : index
    %232 = vector.load %arg4[%c0_135, %c0_136] : memref<8x128xf32, #tpu.memory_space<vmem>>, vector<8x128xf32>
    tpu.vector_store %arg4[%c0_135, %c0_136], %230 {strides = array<i32>} : memref<8x128xf32, #tpu.memory_space<vmem>>, vector<8x128xf32>,
    %c0_137 = arith.constant 0 : index
    %c0_138 = arith.constant 0 : index
    %233 = vector.load %arg2[%c0_137, %c0_138] : memref<128x128xf32, #tpu.memory_space<vmem>>, vector<128x128xf32>
    %cst_139 = arith.constant dense<0.000000e+00> : vector<8x128xf32>
    %234 = tpu.matmul %230, %233, %cst_139 {dimension_numbers = #tpu.dot_dimension_numbers<[1], [0], [0], [1], [0, 0, 1, 1], [], []>} : vector<8x128xf32>, vector<128x128xf32>, vector<8x128xf32> -> vector<8x128xf32>
    %c0_140 = arith.constant 0 : index
    %c0_141 = arith.constant 0 : index
    %235 = vector.load %arg7[%c0_140, %c0_141] : memref<8x128xf32, #tpu.memory_space<vmem>>, vector<8x128xf32>
    %cst_142 = arith.constant 5.000000e-01 : f32
    %236 = vector.broadcast %cst_142 : f32 to vector<8x128xf32>
    %237 = arith.mulf %235, %236 : vector<8x128xf32>
    %c0_143 = arith.constant 0 : index
    %c0_144 = arith.constant 0 : index
    %238 = vector.load %arg6[%c0_143, %c0_144] : memref<8x128xf32, #tpu.memory_space<vmem>>, vector<8x128xf32>
    %cst_145 = arith.constant 1.000000e+00 : f32
    %239 = vector.broadcast %cst_145 : f32 to vector<8x128xf32>
    %240 = arith.subf %239, %238 : vector<8x128xf32>
    %241 = arith.mulf %237, %240 : vector<8x128xf32>
    %242 = arith.addf %241, %234 : vector<8x128xf32>
    %cst_146 = arith.constant 2.000000e+00 : f32
    %243 = vector.broadcast %cst_146 : f32 to vector<8x128xf32>
    %244 = arith.mulf %243, %242 : vector<8x128xf32>
    %245 = vector.broadcast %cst : f32 to vector<8x128xf32>
    %246 = arith.select %16, %244, %245 : vector<8x128xi1>, vector<8x128xf32>
    %cst_147 = arith.constant dense<0xFF800000> : vector<8xf32>
    %247 = vector.multi_reduction <maximumf>, %246, %cst_147 [1] : vector<8x128xf32> to vector<8xf32>
    %248 = vector.shape_cast %247 : vector<8xf32> to vector<8x1xf32>
    %cst_148 = arith.constant dense<0xFF800000> : vector<1xf32>
    %249 = vector.multi_reduction <maximumf>, %248, %cst_148 [0] : vector<8x1xf32> to vector<1xf32>
    %250 = vector.shape_cast %249 : vector<1xf32> to vector<1x1xf32>
    %cst_149 = arith.constant 8.000000e-01 : f32
    %251 = vector.broadcast %cst_149 : f32 to vector<1x1xf32>
    %252 = arith.mulf %251, %250 : vector<1x1xf32>
    %253 = math.tanh %252 : vector<1x1xf32>
    %cst_150 = arith.constant 3.000000e-01 : f32
    %254 = vector.broadcast %cst_150 : f32 to vector<1x1xf32>
    %255 = arith.mulf %254, %253 : vector<1x1xf32>
    %256 = vector.broadcast %255 : vector<1x1xf32> to vector<8x128xf32>
    %257 = arith.cmpf ogt, %244, %256 : vector<8x128xf32>
    %258 = arith.extui %257 : vector<8x128xi1> to vector<8x128xi32>
    %259 = arith.sitofp %258 : vector<8x128xi32> to vector<8x128xf32>
    %c0_151 = arith.constant 0 : index
    %c0_152 = arith.constant 0 : index
    %260 = vector.load %arg7[%c0_151, %c0_152] : memref<8x128xf32, #tpu.memory_space<vmem>>, vector<8x128xf32>
    tpu.vector_store %arg7[%c0_151, %c0_152], %242 {strides = array<i32>} : memref<8x128xf32, #tpu.memory_space<vmem>>, vector<8x128xf32>,
    %c0_153 = arith.constant 0 : index
    %c0_154 = arith.constant 0 : index
    %261 = vector.load %arg6[%c0_153, %c0_154] : memref<8x128xf32, #tpu.memory_space<vmem>>, vector<8x128xf32>
    tpu.vector_store %arg6[%c0_153, %c0_154], %259 {strides = array<i32>} : memref<8x128xf32, #tpu.memory_space<vmem>>, vector<8x128xf32>,
    %c0_155 = arith.constant 0 : index
    %c0_156 = arith.constant 0 : index
    %262 = vector.load %arg3[%c0_155, %c0_156] : memref<8x128xf32, #tpu.memory_space<vmem>>, vector<8x128xf32>
    %263 = arith.addf %262, %259 : vector<8x128xf32>
    %c0_157 = arith.constant 0 : index
    %c0_158 = arith.constant 0 : index
    %264 = vector.load %arg3[%c0_157, %c0_158] : memref<8x128xf32, #tpu.memory_space<vmem>>, vector<8x128xf32>
    tpu.vector_store %arg3[%c0_157, %c0_158], %263 {strides = array<i32>} : memref<8x128xf32, #tpu.memory_space<vmem>>, vector<8x128xf32>,
    %c4_i32 = arith.constant 4 : i32
    %265 = arith.index_cast %c4_i32 : i32 to index
    %c0_159 = arith.constant 0 : index
    %c0_160 = arith.constant 0 : index
    %266 = vector.load %arg1[%265, %c0_159, %c0_160] : memref<8x8x128xf32, #tpu.memory_space<vmem>>, vector<1x8x128xf32>
    %267 = vector.shape_cast %266 : vector<1x8x128xf32> to vector<8x128xf32>
    %c0_161 = arith.constant 0 : index
    %c0_162 = arith.constant 0 : index
    %268 = vector.load %arg5[%c0_161, %c0_162] : memref<8x128xf32, #tpu.memory_space<vmem>>, vector<8x128xf32>
    %cst_163 = arith.constant 5.000000e-01 : f32
    %269 = vector.broadcast %cst_163 : f32 to vector<8x128xf32>
    %270 = arith.mulf %268, %269 : vector<8x128xf32>
    %c0_164 = arith.constant 0 : index
    %c0_165 = arith.constant 0 : index
    %271 = vector.load %arg4[%c0_164, %c0_165] : memref<8x128xf32, #tpu.memory_space<vmem>>, vector<8x128xf32>
    %cst_166 = arith.constant 1.000000e+00 : f32
    %272 = vector.broadcast %cst_166 : f32 to vector<8x128xf32>
    %273 = arith.subf %272, %271 : vector<8x128xf32>
    %274 = arith.mulf %270, %273 : vector<8x128xf32>
    %275 = arith.addf %274, %267 : vector<8x128xf32>
    %cst_167 = arith.constant 2.000000e+00 : f32
    %276 = vector.broadcast %cst_167 : f32 to vector<8x128xf32>
    %277 = arith.mulf %276, %275 : vector<8x128xf32>
    %278 = vector.broadcast %cst : f32 to vector<8x128xf32>
    %279 = arith.select %9, %277, %278 : vector<8x128xi1>, vector<8x128xf32>
    %cst_168 = arith.constant dense<0xFF800000> : vector<8xf32>
    %280 = vector.multi_reduction <maximumf>, %279, %cst_168 [1] : vector<8x128xf32> to vector<8xf32>
    %281 = vector.shape_cast %280 : vector<8xf32> to vector<8x1xf32>
    %cst_169 = arith.constant dense<0xFF800000> : vector<1xf32>
    %282 = vector.multi_reduction <maximumf>, %281, %cst_169 [0] : vector<8x1xf32> to vector<1xf32>
    %283 = vector.shape_cast %282 : vector<1xf32> to vector<1x1xf32>
    %cst_170 = arith.constant 8.000000e-01 : f32
    %284 = vector.broadcast %cst_170 : f32 to vector<1x1xf32>
    %285 = arith.mulf %284, %283 : vector<1x1xf32>
    %286 = math.tanh %285 : vector<1x1xf32>
    %cst_171 = arith.constant 3.000000e-01 : f32
    %287 = vector.broadcast %cst_171 : f32 to vector<1x1xf32>
    %288 = arith.mulf %287, %286 : vector<1x1xf32>
    %289 = vector.broadcast %288 : vector<1x1xf32> to vector<8x128xf32>
    %290 = arith.cmpf ogt, %277, %289 : vector<8x128xf32>
    %291 = arith.extui %290 : vector<8x128xi1> to vector<8x128xi32>
    %292 = arith.sitofp %291 : vector<8x128xi32> to vector<8x128xf32>
    %c0_172 = arith.constant 0 : index
    %c0_173 = arith.constant 0 : index
    %293 = vector.load %arg5[%c0_172, %c0_173] : memref<8x128xf32, #tpu.memory_space<vmem>>, vector<8x128xf32>
    tpu.vector_store %arg5[%c0_172, %c0_173], %275 {strides = array<i32>} : memref<8x128xf32, #tpu.memory_space<vmem>>, vector<8x128xf32>,
    %c0_174 = arith.constant 0 : index
    %c0_175 = arith.constant 0 : index
    %294 = vector.load %arg4[%c0_174, %c0_175] : memref<8x128xf32, #tpu.memory_space<vmem>>, vector<8x128xf32>
    tpu.vector_store %arg4[%c0_174, %c0_175], %292 {strides = array<i32>} : memref<8x128xf32, #tpu.memory_space<vmem>>, vector<8x128xf32>,
    %c0_176 = arith.constant 0 : index
    %c0_177 = arith.constant 0 : index
    %295 = vector.load %arg2[%c0_176, %c0_177] : memref<128x128xf32, #tpu.memory_space<vmem>>, vector<128x128xf32>
    %cst_178 = arith.constant dense<0.000000e+00> : vector<8x128xf32>
    %296 = tpu.matmul %292, %295, %cst_178 {dimension_numbers = #tpu.dot_dimension_numbers<[1], [0], [0], [1], [0, 0, 1, 1], [], []>} : vector<8x128xf32>, vector<128x128xf32>, vector<8x128xf32> -> vector<8x128xf32>
    %c0_179 = arith.constant 0 : index
    %c0_180 = arith.constant 0 : index
    %297 = vector.load %arg7[%c0_179, %c0_180] : memref<8x128xf32, #tpu.memory_space<vmem>>, vector<8x128xf32>
    %cst_181 = arith.constant 5.000000e-01 : f32
    %298 = vector.broadcast %cst_181 : f32 to vector<8x128xf32>
    %299 = arith.mulf %297, %298 : vector<8x128xf32>
    %c0_182 = arith.constant 0 : index
    %c0_183 = arith.constant 0 : index
    %300 = vector.load %arg6[%c0_182, %c0_183] : memref<8x128xf32, #tpu.memory_space<vmem>>, vector<8x128xf32>
    %cst_184 = arith.constant 1.000000e+00 : f32
    %301 = vector.broadcast %cst_184 : f32 to vector<8x128xf32>
    %302 = arith.subf %301, %300 : vector<8x128xf32>
    %303 = arith.mulf %299, %302 : vector<8x128xf32>
    %304 = arith.addf %303, %296 : vector<8x128xf32>
    %cst_185 = arith.constant 2.000000e+00 : f32
    %305 = vector.broadcast %cst_185 : f32 to vector<8x128xf32>
    %306 = arith.mulf %305, %304 : vector<8x128xf32>
    %307 = vector.broadcast %cst : f32 to vector<8x128xf32>
    %308 = arith.select %16, %306, %307 : vector<8x128xi1>, vector<8x128xf32>
    %cst_186 = arith.constant dense<0xFF800000> : vector<8xf32>
    %309 = vector.multi_reduction <maximumf>, %308, %cst_186 [1] : vector<8x128xf32> to vector<8xf32>
    %310 = vector.shape_cast %309 : vector<8xf32> to vector<8x1xf32>
    %cst_187 = arith.constant dense<0xFF800000> : vector<1xf32>
    %311 = vector.multi_reduction <maximumf>, %310, %cst_187 [0] : vector<8x1xf32> to vector<1xf32>
    %312 = vector.shape_cast %311 : vector<1xf32> to vector<1x1xf32>
    %cst_188 = arith.constant 8.000000e-01 : f32
    %313 = vector.broadcast %cst_188 : f32 to vector<1x1xf32>
    %314 = arith.mulf %313, %312 : vector<1x1xf32>
    %315 = math.tanh %314 : vector<1x1xf32>
    %cst_189 = arith.constant 3.000000e-01 : f32
    %316 = vector.broadcast %cst_189 : f32 to vector<1x1xf32>
    %317 = arith.mulf %316, %315 : vector<1x1xf32>
    %318 = vector.broadcast %317 : vector<1x1xf32> to vector<8x128xf32>
    %319 = arith.cmpf ogt, %306, %318 : vector<8x128xf32>
    %320 = arith.extui %319 : vector<8x128xi1> to vector<8x128xi32>
    %321 = arith.sitofp %320 : vector<8x128xi32> to vector<8x128xf32>
    %c0_190 = arith.constant 0 : index
    %c0_191 = arith.constant 0 : index
    %322 = vector.load %arg7[%c0_190, %c0_191] : memref<8x128xf32, #tpu.memory_space<vmem>>, vector<8x128xf32>
    tpu.vector_store %arg7[%c0_190, %c0_191], %304 {strides = array<i32>} : memref<8x128xf32, #tpu.memory_space<vmem>>, vector<8x128xf32>,
    %c0_192 = arith.constant 0 : index
    %c0_193 = arith.constant 0 : index
    %323 = vector.load %arg6[%c0_192, %c0_193] : memref<8x128xf32, #tpu.memory_space<vmem>>, vector<8x128xf32>
    tpu.vector_store %arg6[%c0_192, %c0_193], %321 {strides = array<i32>} : memref<8x128xf32, #tpu.memory_space<vmem>>, vector<8x128xf32>,
    %c0_194 = arith.constant 0 : index
    %c0_195 = arith.constant 0 : index
    %324 = vector.load %arg3[%c0_194, %c0_195] : memref<8x128xf32, #tpu.memory_space<vmem>>, vector<8x128xf32>
    %325 = arith.addf %324, %321 : vector<8x128xf32>
    %c0_196 = arith.constant 0 : index
    %c0_197 = arith.constant 0 : index
    %326 = vector.load %arg3[%c0_196, %c0_197] : memref<8x128xf32, #tpu.memory_space<vmem>>, vector<8x128xf32>
    tpu.vector_store %arg3[%c0_196, %c0_197], %325 {strides = array<i32>} : memref<8x128xf32, #tpu.memory_space<vmem>>, vector<8x128xf32>,
    %c5_i32 = arith.constant 5 : i32
    %327 = arith.index_cast %c5_i32 : i32 to index
    %c0_198 = arith.constant 0 : index
    %c0_199 = arith.constant 0 : index
    %328 = vector.load %arg1[%327, %c0_198, %c0_199] : memref<8x8x128xf32, #tpu.memory_space<vmem>>, vector<1x8x128xf32>
    %329 = vector.shape_cast %328 : vector<1x8x128xf32> to vector<8x128xf32>
    %c0_200 = arith.constant 0 : index
    %c0_201 = arith.constant 0 : index
    %330 = vector.load %arg5[%c0_200, %c0_201] : memref<8x128xf32, #tpu.memory_space<vmem>>, vector<8x128xf32>
    %cst_202 = arith.constant 5.000000e-01 : f32
    %331 = vector.broadcast %cst_202 : f32 to vector<8x128xf32>
    %332 = arith.mulf %330, %331 : vector<8x128xf32>
    %c0_203 = arith.constant 0 : index
    %c0_204 = arith.constant 0 : index
    %333 = vector.load %arg4[%c0_203, %c0_204] : memref<8x128xf32, #tpu.memory_space<vmem>>, vector<8x128xf32>
    %cst_205 = arith.constant 1.000000e+00 : f32
    %334 = vector.broadcast %cst_205 : f32 to vector<8x128xf32>
    %335 = arith.subf %334, %333 : vector<8x128xf32>
    %336 = arith.mulf %332, %335 : vector<8x128xf32>
    %337 = arith.addf %336, %329 : vector<8x128xf32>
    %cst_206 = arith.constant 2.000000e+00 : f32
    %338 = vector.broadcast %cst_206 : f32 to vector<8x128xf32>
    %339 = arith.mulf %338, %337 : vector<8x128xf32>
    %340 = vector.broadcast %cst : f32 to vector<8x128xf32>
    %341 = arith.select %9, %339, %340 : vector<8x128xi1>, vector<8x128xf32>
    %cst_207 = arith.constant dense<0xFF800000> : vector<8xf32>
    %342 = vector.multi_reduction <maximumf>, %341, %cst_207 [1] : vector<8x128xf32> to vector<8xf32>
    %343 = vector.shape_cast %342 : vector<8xf32> to vector<8x1xf32>
    %cst_208 = arith.constant dense<0xFF800000> : vector<1xf32>
    %344 = vector.multi_reduction <maximumf>, %343, %cst_208 [0] : vector<8x1xf32> to vector<1xf32>
    %345 = vector.shape_cast %344 : vector<1xf32> to vector<1x1xf32>
    %cst_209 = arith.constant 8.000000e-01 : f32
    %346 = vector.broadcast %cst_209 : f32 to vector<1x1xf32>
    %347 = arith.mulf %346, %345 : vector<1x1xf32>
    %348 = math.tanh %347 : vector<1x1xf32>
    %cst_210 = arith.constant 3.000000e-01 : f32
    %349 = vector.broadcast %cst_210 : f32 to vector<1x1xf32>
    %350 = arith.mulf %349, %348 : vector<1x1xf32>
    %351 = vector.broadcast %350 : vector<1x1xf32> to vector<8x128xf32>
    %352 = arith.cmpf ogt, %339, %351 : vector<8x128xf32>
    %353 = arith.extui %352 : vector<8x128xi1> to vector<8x128xi32>
    %354 = arith.sitofp %353 : vector<8x128xi32> to vector<8x128xf32>
    %c0_211 = arith.constant 0 : index
    %c0_212 = arith.constant 0 : index
    %355 = vector.load %arg5[%c0_211, %c0_212] : memref<8x128xf32, #tpu.memory_space<vmem>>, vector<8x128xf32>
    tpu.vector_store %arg5[%c0_211, %c0_212], %337 {strides = array<i32>} : memref<8x128xf32, #tpu.memory_space<vmem>>, vector<8x128xf32>,
    %c0_213 = arith.constant 0 : index
    %c0_214 = arith.constant 0 : index
    %356 = vector.load %arg4[%c0_213, %c0_214] : memref<8x128xf32, #tpu.memory_space<vmem>>, vector<8x128xf32>
    tpu.vector_store %arg4[%c0_213, %c0_214], %354 {strides = array<i32>} : memref<8x128xf32, #tpu.memory_space<vmem>>, vector<8x128xf32>,
    %c0_215 = arith.constant 0 : index
    %c0_216 = arith.constant 0 : index
    %357 = vector.load %arg2[%c0_215, %c0_216] : memref<128x128xf32, #tpu.memory_space<vmem>>, vector<128x128xf32>
    %cst_217 = arith.constant dense<0.000000e+00> : vector<8x128xf32>
    %358 = tpu.matmul %354, %357, %cst_217 {dimension_numbers = #tpu.dot_dimension_numbers<[1], [0], [0], [1], [0, 0, 1, 1], [], []>} : vector<8x128xf32>, vector<128x128xf32>, vector<8x128xf32> -> vector<8x128xf32>
    %c0_218 = arith.constant 0 : index
    %c0_219 = arith.constant 0 : index
    %359 = vector.load %arg7[%c0_218, %c0_219] : memref<8x128xf32, #tpu.memory_space<vmem>>, vector<8x128xf32>
    %cst_220 = arith.constant 5.000000e-01 : f32
    %360 = vector.broadcast %cst_220 : f32 to vector<8x128xf32>
    %361 = arith.mulf %359, %360 : vector<8x128xf32>
    %c0_221 = arith.constant 0 : index
    %c0_222 = arith.constant 0 : index
    %362 = vector.load %arg6[%c0_221, %c0_222] : memref<8x128xf32, #tpu.memory_space<vmem>>, vector<8x128xf32>
    %cst_223 = arith.constant 1.000000e+00 : f32
    %363 = vector.broadcast %cst_223 : f32 to vector<8x128xf32>
    %364 = arith.subf %363, %362 : vector<8x128xf32>
    %365 = arith.mulf %361, %364 : vector<8x128xf32>
    %366 = arith.addf %365, %358 : vector<8x128xf32>
    %cst_224 = arith.constant 2.000000e+00 : f32
    %367 = vector.broadcast %cst_224 : f32 to vector<8x128xf32>
    %368 = arith.mulf %367, %366 : vector<8x128xf32>
    %369 = vector.broadcast %cst : f32 to vector<8x128xf32>
    %370 = arith.select %16, %368, %369 : vector<8x128xi1>, vector<8x128xf32>
    %cst_225 = arith.constant dense<0xFF800000> : vector<8xf32>
    %371 = vector.multi_reduction <maximumf>, %370, %cst_225 [1] : vector<8x128xf32> to vector<8xf32>
    %372 = vector.shape_cast %371 : vector<8xf32> to vector<8x1xf32>
    %cst_226 = arith.constant dense<0xFF800000> : vector<1xf32>
    %373 = vector.multi_reduction <maximumf>, %372, %cst_226 [0] : vector<8x1xf32> to vector<1xf32>
    %374 = vector.shape_cast %373 : vector<1xf32> to vector<1x1xf32>
    %cst_227 = arith.constant 8.000000e-01 : f32
    %375 = vector.broadcast %cst_227 : f32 to vector<1x1xf32>
    %376 = arith.mulf %375, %374 : vector<1x1xf32>
    %377 = math.tanh %376 : vector<1x1xf32>
    %cst_228 = arith.constant 3.000000e-01 : f32
    %378 = vector.broadcast %cst_228 : f32 to vector<1x1xf32>
    %379 = arith.mulf %378, %377 : vector<1x1xf32>
    %380 = vector.broadcast %379 : vector<1x1xf32> to vector<8x128xf32>
    %381 = arith.cmpf ogt, %368, %380 : vector<8x128xf32>
    %382 = arith.extui %381 : vector<8x128xi1> to vector<8x128xi32>
    %383 = arith.sitofp %382 : vector<8x128xi32> to vector<8x128xf32>
    %c0_229 = arith.constant 0 : index
    %c0_230 = arith.constant 0 : index
    %384 = vector.load %arg7[%c0_229, %c0_230] : memref<8x128xf32, #tpu.memory_space<vmem>>, vector<8x128xf32>
    tpu.vector_store %arg7[%c0_229, %c0_230], %366 {strides = array<i32>} : memref<8x128xf32, #tpu.memory_space<vmem>>, vector<8x128xf32>,
    %c0_231 = arith.constant 0 : index
    %c0_232 = arith.constant 0 : index
    %385 = vector.load %arg6[%c0_231, %c0_232] : memref<8x128xf32, #tpu.memory_space<vmem>>, vector<8x128xf32>
    tpu.vector_store %arg6[%c0_231, %c0_232], %383 {strides = array<i32>} : memref<8x128xf32, #tpu.memory_space<vmem>>, vector<8x128xf32>,
    %c0_233 = arith.constant 0 : index
    %c0_234 = arith.constant 0 : index
    %386 = vector.load %arg3[%c0_233, %c0_234] : memref<8x128xf32, #tpu.memory_space<vmem>>, vector<8x128xf32>
    %387 = arith.addf %386, %383 : vector<8x128xf32>
    %c0_235 = arith.constant 0 : index
    %c0_236 = arith.constant 0 : index
    %388 = vector.load %arg3[%c0_235, %c0_236] : memref<8x128xf32, #tpu.memory_space<vmem>>, vector<8x128xf32>
    tpu.vector_store %arg3[%c0_235, %c0_236], %387 {strides = array<i32>} : memref<8x128xf32, #tpu.memory_space<vmem>>, vector<8x128xf32>,
    %c6_i32 = arith.constant 6 : i32
    %389 = arith.index_cast %c6_i32 : i32 to index
    %c0_237 = arith.constant 0 : index
    %c0_238 = arith.constant 0 : index
    %390 = vector.load %arg1[%389, %c0_237, %c0_238] : memref<8x8x128xf32, #tpu.memory_space<vmem>>, vector<1x8x128xf32>
    %391 = vector.shape_cast %390 : vector<1x8x128xf32> to vector<8x128xf32>
    %c0_239 = arith.constant 0 : index
    %c0_240 = arith.constant 0 : index
    %392 = vector.load %arg5[%c0_239, %c0_240] : memref<8x128xf32, #tpu.memory_space<vmem>>, vector<8x128xf32>
    %cst_241 = arith.constant 5.000000e-01 : f32
    %393 = vector.broadcast %cst_241 : f32 to vector<8x128xf32>
    %394 = arith.mulf %392, %393 : vector<8x128xf32>
    %c0_242 = arith.constant 0 : index
    %c0_243 = arith.constant 0 : index
    %395 = vector.load %arg4[%c0_242, %c0_243] : memref<8x128xf32, #tpu.memory_space<vmem>>, vector<8x128xf32>
    %cst_244 = arith.constant 1.000000e+00 : f32
    %396 = vector.broadcast %cst_244 : f32 to vector<8x128xf32>
    %397 = arith.subf %396, %395 : vector<8x128xf32>
    %398 = arith.mulf %394, %397 : vector<8x128xf32>
    %399 = arith.addf %398, %391 : vector<8x128xf32>
    %cst_245 = arith.constant 2.000000e+00 : f32
    %400 = vector.broadcast %cst_245 : f32 to vector<8x128xf32>
    %401 = arith.mulf %400, %399 : vector<8x128xf32>
    %402 = vector.broadcast %cst : f32 to vector<8x128xf32>
    %403 = arith.select %9, %401, %402 : vector<8x128xi1>, vector<8x128xf32>
    %cst_246 = arith.constant dense<0xFF800000> : vector<8xf32>
    %404 = vector.multi_reduction <maximumf>, %403, %cst_246 [1] : vector<8x128xf32> to vector<8xf32>
    %405 = vector.shape_cast %404 : vector<8xf32> to vector<8x1xf32>
    %cst_247 = arith.constant dense<0xFF800000> : vector<1xf32>
    %406 = vector.multi_reduction <maximumf>, %405, %cst_247 [0] : vector<8x1xf32> to vector<1xf32>
    %407 = vector.shape_cast %406 : vector<1xf32> to vector<1x1xf32>
    %cst_248 = arith.constant 8.000000e-01 : f32
    %408 = vector.broadcast %cst_248 : f32 to vector<1x1xf32>
    %409 = arith.mulf %408, %407 : vector<1x1xf32>
    %410 = math.tanh %409 : vector<1x1xf32>
    %cst_249 = arith.constant 3.000000e-01 : f32
    %411 = vector.broadcast %cst_249 : f32 to vector<1x1xf32>
    %412 = arith.mulf %411, %410 : vector<1x1xf32>
    %413 = vector.broadcast %412 : vector<1x1xf32> to vector<8x128xf32>
    %414 = arith.cmpf ogt, %401, %413 : vector<8x128xf32>
    %415 = arith.extui %414 : vector<8x128xi1> to vector<8x128xi32>
    %416 = arith.sitofp %415 : vector<8x128xi32> to vector<8x128xf32>
    %c0_250 = arith.constant 0 : index
    %c0_251 = arith.constant 0 : index
    %417 = vector.load %arg5[%c0_250, %c0_251] : memref<8x128xf32, #tpu.memory_space<vmem>>, vector<8x128xf32>
    tpu.vector_store %arg5[%c0_250, %c0_251], %399 {strides = array<i32>} : memref<8x128xf32, #tpu.memory_space<vmem>>, vector<8x128xf32>,
    %c0_252 = arith.constant 0 : index
    %c0_253 = arith.constant 0 : index
    %418 = vector.load %arg4[%c0_252, %c0_253] : memref<8x128xf32, #tpu.memory_space<vmem>>, vector<8x128xf32>
    tpu.vector_store %arg4[%c0_252, %c0_253], %416 {strides = array<i32>} : memref<8x128xf32, #tpu.memory_space<vmem>>, vector<8x128xf32>,
    %c0_254 = arith.constant 0 : index
    %c0_255 = arith.constant 0 : index
    %419 = vector.load %arg2[%c0_254, %c0_255] : memref<128x128xf32, #tpu.memory_space<vmem>>, vector<128x128xf32>
    %cst_256 = arith.constant dense<0.000000e+00> : vector<8x128xf32>
    %420 = tpu.matmul %416, %419, %cst_256 {dimension_numbers = #tpu.dot_dimension_numbers<[1], [0], [0], [1], [0, 0, 1, 1], [], []>} : vector<8x128xf32>, vector<128x128xf32>, vector<8x128xf32> -> vector<8x128xf32>
    %c0_257 = arith.constant 0 : index
    %c0_258 = arith.constant 0 : index
    %421 = vector.load %arg7[%c0_257, %c0_258] : memref<8x128xf32, #tpu.memory_space<vmem>>, vector<8x128xf32>
    %cst_259 = arith.constant 5.000000e-01 : f32
    %422 = vector.broadcast %cst_259 : f32 to vector<8x128xf32>
    %423 = arith.mulf %421, %422 : vector<8x128xf32>
    %c0_260 = arith.constant 0 : index
    %c0_261 = arith.constant 0 : index
    %424 = vector.load %arg6[%c0_260, %c0_261] : memref<8x128xf32, #tpu.memory_space<vmem>>, vector<8x128xf32>
    %cst_262 = arith.constant 1.000000e+00 : f32
    %425 = vector.broadcast %cst_262 : f32 to vector<8x128xf32>
    %426 = arith.subf %425, %424 : vector<8x128xf32>
    %427 = arith.mulf %423, %426 : vector<8x128xf32>
    %428 = arith.addf %427, %420 : vector<8x128xf32>
    %cst_263 = arith.constant 2.000000e+00 : f32
    %429 = vector.broadcast %cst_263 : f32 to vector<8x128xf32>
    %430 = arith.mulf %429, %428 : vector<8x128xf32>
    %431 = vector.broadcast %cst : f32 to vector<8x128xf32>
    %432 = arith.select %16, %430, %431 : vector<8x128xi1>, vector<8x128xf32>
    %cst_264 = arith.constant dense<0xFF800000> : vector<8xf32>
    %433 = vector.multi_reduction <maximumf>, %432, %cst_264 [1] : vector<8x128xf32> to vector<8xf32>
    %434 = vector.shape_cast %433 : vector<8xf32> to vector<8x1xf32>
    %cst_265 = arith.constant dense<0xFF800000> : vector<1xf32>
    %435 = vector.multi_reduction <maximumf>, %434, %cst_265 [0] : vector<8x1xf32> to vector<1xf32>
    %436 = vector.shape_cast %435 : vector<1xf32> to vector<1x1xf32>
    %cst_266 = arith.constant 8.000000e-01 : f32
    %437 = vector.broadcast %cst_266 : f32 to vector<1x1xf32>
    %438 = arith.mulf %437, %436 : vector<1x1xf32>
    %439 = math.tanh %438 : vector<1x1xf32>
    %cst_267 = arith.constant 3.000000e-01 : f32
    %440 = vector.broadcast %cst_267 : f32 to vector<1x1xf32>
    %441 = arith.mulf %440, %439 : vector<1x1xf32>
    %442 = vector.broadcast %441 : vector<1x1xf32> to vector<8x128xf32>
    %443 = arith.cmpf ogt, %430, %442 : vector<8x128xf32>
    %444 = arith.extui %443 : vector<8x128xi1> to vector<8x128xi32>
    %445 = arith.sitofp %444 : vector<8x128xi32> to vector<8x128xf32>
    %c0_268 = arith.constant 0 : index
    %c0_269 = arith.constant 0 : index
    %446 = vector.load %arg7[%c0_268, %c0_269] : memref<8x128xf32, #tpu.memory_space<vmem>>, vector<8x128xf32>
    tpu.vector_store %arg7[%c0_268, %c0_269], %428 {strides = array<i32>} : memref<8x128xf32, #tpu.memory_space<vmem>>, vector<8x128xf32>,
    %c0_270 = arith.constant 0 : index
    %c0_271 = arith.constant 0 : index
    %447 = vector.load %arg6[%c0_270, %c0_271] : memref<8x128xf32, #tpu.memory_space<vmem>>, vector<8x128xf32>
    tpu.vector_store %arg6[%c0_270, %c0_271], %445 {strides = array<i32>} : memref<8x128xf32, #tpu.memory_space<vmem>>, vector<8x128xf32>,
    %c0_272 = arith.constant 0 : index
    %c0_273 = arith.constant 0 : index
    %448 = vector.load %arg3[%c0_272, %c0_273] : memref<8x128xf32, #tpu.memory_space<vmem>>, vector<8x128xf32>
    %449 = arith.addf %448, %445 : vector<8x128xf32>
    %c0_274 = arith.constant 0 : index
    %c0_275 = arith.constant 0 : index
    %450 = vector.load %arg3[%c0_274, %c0_275] : memref<8x128xf32, #tpu.memory_space<vmem>>, vector<8x128xf32>
    tpu.vector_store %arg3[%c0_274, %c0_275], %449 {strides = array<i32>} : memref<8x128xf32, #tpu.memory_space<vmem>>, vector<8x128xf32>,
    %c7_i32 = arith.constant 7 : i32
    %451 = arith.index_cast %c7_i32 : i32 to index
    %c0_276 = arith.constant 0 : index
    %c0_277 = arith.constant 0 : index
    %452 = vector.load %arg1[%451, %c0_276, %c0_277] : memref<8x8x128xf32, #tpu.memory_space<vmem>>, vector<1x8x128xf32>
    %453 = vector.shape_cast %452 : vector<1x8x128xf32> to vector<8x128xf32>
    %c0_278 = arith.constant 0 : index
    %c0_279 = arith.constant 0 : index
    %454 = vector.load %arg5[%c0_278, %c0_279] : memref<8x128xf32, #tpu.memory_space<vmem>>, vector<8x128xf32>
    %cst_280 = arith.constant 5.000000e-01 : f32
    %455 = vector.broadcast %cst_280 : f32 to vector<8x128xf32>
    %456 = arith.mulf %454, %455 : vector<8x128xf32>
    %c0_281 = arith.constant 0 : index
    %c0_282 = arith.constant 0 : index
    %457 = vector.load %arg4[%c0_281, %c0_282] : memref<8x128xf32, #tpu.memory_space<vmem>>, vector<8x128xf32>
    %cst_283 = arith.constant 1.000000e+00 : f32
    %458 = vector.broadcast %cst_283 : f32 to vector<8x128xf32>
    %459 = arith.subf %458, %457 : vector<8x128xf32>
    %460 = arith.mulf %456, %459 : vector<8x128xf32>
    %461 = arith.addf %460, %453 : vector<8x128xf32>
    %cst_284 = arith.constant 2.000000e+00 : f32
    %462 = vector.broadcast %cst_284 : f32 to vector<8x128xf32>
    %463 = arith.mulf %462, %461 : vector<8x128xf32>
    %464 = vector.broadcast %cst : f32 to vector<8x128xf32>
    %465 = arith.select %9, %463, %464 : vector<8x128xi1>, vector<8x128xf32>
    %cst_285 = arith.constant dense<0xFF800000> : vector<8xf32>
    %466 = vector.multi_reduction <maximumf>, %465, %cst_285 [1] : vector<8x128xf32> to vector<8xf32>
    %467 = vector.shape_cast %466 : vector<8xf32> to vector<8x1xf32>
    %cst_286 = arith.constant dense<0xFF800000> : vector<1xf32>
    %468 = vector.multi_reduction <maximumf>, %467, %cst_286 [0] : vector<8x1xf32> to vector<1xf32>
    %469 = vector.shape_cast %468 : vector<1xf32> to vector<1x1xf32>
    %cst_287 = arith.constant 8.000000e-01 : f32
    %470 = vector.broadcast %cst_287 : f32 to vector<1x1xf32>
    %471 = arith.mulf %470, %469 : vector<1x1xf32>
    %472 = math.tanh %471 : vector<1x1xf32>
    %cst_288 = arith.constant 3.000000e-01 : f32
    %473 = vector.broadcast %cst_288 : f32 to vector<1x1xf32>
    %474 = arith.mulf %473, %472 : vector<1x1xf32>
    %475 = vector.broadcast %474 : vector<1x1xf32> to vector<8x128xf32>
    %476 = arith.cmpf ogt, %463, %475 : vector<8x128xf32>
    %477 = arith.extui %476 : vector<8x128xi1> to vector<8x128xi32>
    %478 = arith.sitofp %477 : vector<8x128xi32> to vector<8x128xf32>
    %c0_289 = arith.constant 0 : index
    %c0_290 = arith.constant 0 : index
    %479 = vector.load %arg5[%c0_289, %c0_290] : memref<8x128xf32, #tpu.memory_space<vmem>>, vector<8x128xf32>
    tpu.vector_store %arg5[%c0_289, %c0_290], %461 {strides = array<i32>} : memref<8x128xf32, #tpu.memory_space<vmem>>, vector<8x128xf32>,
    %c0_291 = arith.constant 0 : index
    %c0_292 = arith.constant 0 : index
    %480 = vector.load %arg4[%c0_291, %c0_292] : memref<8x128xf32, #tpu.memory_space<vmem>>, vector<8x128xf32>
    tpu.vector_store %arg4[%c0_291, %c0_292], %478 {strides = array<i32>} : memref<8x128xf32, #tpu.memory_space<vmem>>, vector<8x128xf32>,
    %c0_293 = arith.constant 0 : index
    %c0_294 = arith.constant 0 : index
    %481 = vector.load %arg2[%c0_293, %c0_294] : memref<128x128xf32, #tpu.memory_space<vmem>>, vector<128x128xf32>
    %cst_295 = arith.constant dense<0.000000e+00> : vector<8x128xf32>
    %482 = tpu.matmul %478, %481, %cst_295 {dimension_numbers = #tpu.dot_dimension_numbers<[1], [0], [0], [1], [0, 0, 1, 1], [], []>} : vector<8x128xf32>, vector<128x128xf32>, vector<8x128xf32> -> vector<8x128xf32>
    %c0_296 = arith.constant 0 : index
    %c0_297 = arith.constant 0 : index
    %483 = vector.load %arg7[%c0_296, %c0_297] : memref<8x128xf32, #tpu.memory_space<vmem>>, vector<8x128xf32>
    %cst_298 = arith.constant 5.000000e-01 : f32
    %484 = vector.broadcast %cst_298 : f32 to vector<8x128xf32>
    %485 = arith.mulf %483, %484 : vector<8x128xf32>
    %c0_299 = arith.constant 0 : index
    %c0_300 = arith.constant 0 : index
    %486 = vector.load %arg6[%c0_299, %c0_300] : memref<8x128xf32, #tpu.memory_space<vmem>>, vector<8x128xf32>
    %cst_301 = arith.constant 1.000000e+00 : f32
    %487 = vector.broadcast %cst_301 : f32 to vector<8x128xf32>
    %488 = arith.subf %487, %486 : vector<8x128xf32>
    %489 = arith.mulf %485, %488 : vector<8x128xf32>
    %490 = arith.addf %489, %482 : vector<8x128xf32>
    %cst_302 = arith.constant 2.000000e+00 : f32
    %491 = vector.broadcast %cst_302 : f32 to vector<8x128xf32>
    %492 = arith.mulf %491, %490 : vector<8x128xf32>
    %493 = vector.broadcast %cst : f32 to vector<8x128xf32>
    %494 = arith.select %16, %492, %493 : vector<8x128xi1>, vector<8x128xf32>
    %cst_303 = arith.constant dense<0xFF800000> : vector<8xf32>
    %495 = vector.multi_reduction <maximumf>, %494, %cst_303 [1] : vector<8x128xf32> to vector<8xf32>
    %496 = vector.shape_cast %495 : vector<8xf32> to vector<8x1xf32>
    %cst_304 = arith.constant dense<0xFF800000> : vector<1xf32>
    %497 = vector.multi_reduction <maximumf>, %496, %cst_304 [0] : vector<8x1xf32> to vector<1xf32>
    %498 = vector.shape_cast %497 : vector<1xf32> to vector<1x1xf32>
    %cst_305 = arith.constant 8.000000e-01 : f32
    %499 = vector.broadcast %cst_305 : f32 to vector<1x1xf32>
    %500 = arith.mulf %499, %498 : vector<1x1xf32>
    %501 = math.tanh %500 : vector<1x1xf32>
    %cst_306 = arith.constant 3.000000e-01 : f32
    %502 = vector.broadcast %cst_306 : f32 to vector<1x1xf32>
    %503 = arith.mulf %502, %501 : vector<1x1xf32>
    %504 = vector.broadcast %503 : vector<1x1xf32> to vector<8x128xf32>
    %505 = arith.cmpf ogt, %492, %504 : vector<8x128xf32>
    %506 = arith.extui %505 : vector<8x128xi1> to vector<8x128xi32>
    %507 = arith.sitofp %506 : vector<8x128xi32> to vector<8x128xf32>
    %c0_307 = arith.constant 0 : index
    %c0_308 = arith.constant 0 : index
    %508 = vector.load %arg7[%c0_307, %c0_308] : memref<8x128xf32, #tpu.memory_space<vmem>>, vector<8x128xf32>
    tpu.vector_store %arg7[%c0_307, %c0_308], %490 {strides = array<i32>} : memref<8x128xf32, #tpu.memory_space<vmem>>, vector<8x128xf32>,
    %c0_309 = arith.constant 0 : index
    %c0_310 = arith.constant 0 : index
    %509 = vector.load %arg6[%c0_309, %c0_310] : memref<8x128xf32, #tpu.memory_space<vmem>>, vector<8x128xf32>
    tpu.vector_store %arg6[%c0_309, %c0_310], %507 {strides = array<i32>} : memref<8x128xf32, #tpu.memory_space<vmem>>, vector<8x128xf32>,
    %c0_311 = arith.constant 0 : index
    %c0_312 = arith.constant 0 : index
    %510 = vector.load %arg3[%c0_311, %c0_312] : memref<8x128xf32, #tpu.memory_space<vmem>>, vector<8x128xf32>
    %511 = arith.addf %510, %507 : vector<8x128xf32>
    %c0_313 = arith.constant 0 : index
    %c0_314 = arith.constant 0 : index
    %512 = vector.load %arg3[%c0_313, %c0_314] : memref<8x128xf32, #tpu.memory_space<vmem>>, vector<8x128xf32>
    tpu.vector_store %arg3[%c0_313, %c0_314], %511 {strides = array<i32>} : memref<8x128xf32, #tpu.memory_space<vmem>>, vector<8x128xf32>,
    %c8_i32_315 = arith.constant 8 : i32
    return
  }
  func.func @transform_0(%arg0: i32) -> (i32, i32, i32) {
    %c0_i32 = arith.constant 0 : i32
    %c0_i32_0 = arith.constant 0 : i32
    %c0_i32_1 = arith.constant 0 : i32
    return %arg0, %c0_i32, %c0_i32_0 : i32, i32, i32
  }
  func.func @transform_1(%arg0: i32) -> (i32, i32) {
    %c0_i32 = arith.constant 0 : i32
    %c0_i32_0 = arith.constant 0 : i32
    %c0_i32_1 = arith.constant 0 : i32
    return %c0_i32, %c0_i32_0 : i32, i32
  }
  func.func @transform_2(%arg0: i32) -> (i32, i32) {
    %c0_i32 = arith.constant 0 : i32
    %c0_i32_0 = arith.constant 0 : i32
    %c0_i32_1 = arith.constant 0 : i32
    return %c0_i32, %c0_i32_0 : i32, i32
  }
}

</mosaic_0001>

<bundles_post_ra>
// kernel: tpu_custom_call.1
= control target key start
LH: loop header
LB: loop body
LE: loop exit
PB: predicated region body
PF: predicated region fallthrough
CT: control target
= control target key end

     0   :  { %7 = vsyncpa [#allocation7], 0  ;;  %s2171_s0 = inlined_call_operand.hbm [shape: f32[8,8,128], index: 0, kind: input, shape index: {}]   ;;  %s2172_s1 = inlined_call_operand.hbm [shape: f32[128,128], index: 1, kind: input, shape index: {}]   ;;  %s2173_s2 = inlined_call_operand.hbm [shape: f32[8,128], index: 2, kind: output, shape index: {}]  }
   0x1   :  { %8 = vsyncpa [#allocation10], 0 }
   0x2   :  { %9 = vsyncpa [#allocation8], 0  ;;  %s1731_s9 = smov [#allocation6]  }
   0x3   :  { %s15_s10 = sshll.u32 %s1731_s9, 4  ;;  %s16_s10 = int_to_ptr.vmem [resolvable:$true] %s15_s10 }
   0x4   :  { %s1673_s11 = scalar_lea.vmem %s16_s10, 1024  ;;  %p1678_p1 = scmp.lt.s32.totalorder %s16_s10, %s16_s10 }
   0x5   :  { %p1674_p0 = scmp.ne.s32.totalorder %s16_s10, %s1673_s11  ;;  %p1679_p2 = scmp.lt.s32.totalorder %s1673_s11, %s1673_s11 }
   0x7   :  { %p1680_p3 = por %p1679_p2, %p1678_p1 }
   0x9   :  { %p1681_p4 = pnand %p1680_p3, %p1674_p0 }
   0xb   :  { %1684 = shalt.err (!%p1681_p4)
}
   0xc   :  { %s1732_s12 = smov 128   ;;  %s1733_s13 = smov 8  }
   0xd   :  { %21 = dma.hbm_to_vmem [thread:$0]  %s2171_s0, 1024, %s16_s10, [#allocation7], %s1732_s12, %s1732_s12, %s1733_s13  }
   0xe   :  { %s1734_s16 = smov [#allocation9]  }
   0xf   :  { %s27_s17 = sshll.u32 %s1734_s16, 4  ;;  %s28_s17 = int_to_ptr.vmem [resolvable:$true] %s27_s17 }
  0x10   :  { %s1693_s18 = scalar_lea.vmem %s28_s17, 2048  ;;  %p1698_p6 = scmp.lt.s32.totalorder %s28_s17, %s28_s17 }
  0x11   :  { %p1694_p5 = scmp.ne.s32.totalorder %s28_s17, %s1693_s18  ;;  %p1699_p7 = scmp.lt.s32.totalorder %s1693_s18, %s1693_s18 }
  0x13   :  { %p1700_p8 = por %p1699_p7, %p1698_p6 }
  0x15   :  { %p1701_p9 = pnand %p1700_p8, %p1694_p5 }
  0x17   :  { %1704 = shalt.err (!%p1701_p9)
}
  0x18   :  { %33 = dma.hbm_to_vmem [thread:$0]  %s2172_s1, 2048, %s28_s17, [#allocation10], %s1732_s12, %s1732_s12, %s1733_s13  }
  0x19   :  { %1725 = dma.done.wait [#allocation7], 1024  }
  0x1a   :  { %1726 = vsyncadd [#allocation7], 4294966272 }
  0x1b   :  { %1727 = dma.done.wait [#allocation10], 2048  }
  0x1c   :  { %1728 = vsyncadd [#allocation10], 4294965248  ;;  %v49_v0 = vlaneseq  ;;  %v1735_v1 = vmov 0.0   ;;  %v1774_v5 = vld [vmem:[#allocation6] sm:$0xff]  ;;  %v1782_v8 = vld [vmem:[#allocation9 + $0x78] sm:$0xff]  ;;  %vm1736_vm3 = vmmov 0  }
  0x1d   :  { %1345 = vmatprep.subr.mxu0 %v1735_v1  ;;  %1380 = vmatprep.subr.mxu1 %v1735_v1  ;;  %v1777_v6 = vmul.f32 2.0, %v1774_v5  ;;  %v1787_v9 = vld [vmem:[#allocation9 + $0x70] sm:$0xff]  ;;  %v1793_v10 = vld [vmem:[#allocation9 + $0x68] sm:$0xff]  ;;  %v1799_v11 = vld [vmem:[#allocation9 + $0x60] sm:$0xff]  ;;  %v199_v34 = vmul.f32 0.5, %v1774_v5  ;;  %v1737_v36 = vmov 1.0  }
  0x1e   :  { %v1762_v2 = vshrl.u32 %v49_v0, 7  ;;  %v1764_v3 = vand.u32 127, %v49_v0  ;;  %1346 = vmatpush3.msra.mxu0 %v1782_v8  ;;  %1381 = vmatpush3.msra.mxu1 %v1782_v8  ;;  %v1805_v12 = vld [vmem:[#allocation9 + $0x58] sm:$0xff]  ;;  %v1811_v13 = vld [vmem:[#allocation9 + $0x50] sm:$0xff]  ;;  %v1817_v14 = vld [vmem:[#allocation9 + $0x48] sm:$0xff]  ;;  %s1738_s0 = smov [#allocation11]  }
  0x1f   :  { %1347 = vmatprep.subr.mxu0 %v1735_v1  ;;  %1382 = vmatprep.subr.mxu1 %v1735_v1  ;;  %v1823_v15 = vld [vmem:[#allocation9 + $0x40] sm:$0xff]  ;;  %v1827_v16 = vld [vmem:[#allocation9 + $0x38] sm:$0xff]  ;;  %v1831_v17 = vld [vmem:[#allocation9 + $0x30] sm:$0xff]  ;;  %s1175_s1 = sshll.u32 %s1738_s0, 4  ;;  %s1176_s1 = int_to_ptr.vmem [resolvable:$true] %s1175_s1 }
  0x20   :  { %vm51_vm0 = vcmp.lt.s32.totalorder %v1762_v2, 2  ;;  %vm54_vm1 = vcmp.lt.s32.totalorder %v1764_v3, 32  ;;  %1348 = vmatpush3.msra.mxu0 %v1787_v9  ;;  %1383 = vmatpush3.msra.mxu1 %v1787_v9  ;;  %v1838_v18 = vld [vmem:[#allocation9 + $0x28] sm:$0xff]  ;;  %v1844_v19 = vld [vmem:[#allocation9 + $0x20] sm:$0xff]  ;;  %v1850_v20 = vld [vmem:[#allocation9 + $0x18] sm:$0xff]  ;;  %vm56_vm6 = vcmp.lt.s32.totalorder %v1764_v3, 8  ;;  %p1710_p11 = scmp.lt.s32.totalorder %s1176_s1, %s1176_s1 }
  0x21   :  { %vm1770_vm2 = vmand %vm51_vm0, %vm54_vm1  ;;  %1349 = vmatprep.subr.mxu0 %v1735_v1  ;;  %1384 = vmatprep.subr.mxu1 %v1735_v1  ;;  %v1856_v21 = vld [vmem:[#allocation9 + $0x10] sm:$0xff]  ;;  %v1862_v22 = vld [vmem:[#allocation9 + $0x8] sm:$0xff]  ;;  %s1705_s21 = scalar_lea.vmem %s1176_s1, 128 }
  0x22   :  { %v66_v7 = vsel %vm1770_vm2, %v1777_v6, -inf  ;;  %1350 = vmatpush3.msra.mxu0 %v1793_v10  ;;  %1385 = vmatpush3.msra.mxu1 %v1793_v10  ;;  %v1868_v23 = vld [vmem:[#allocation9] sm:$0xff]  ;;  %v197_v38 = vld [vmem:[#allocation6 + $0x8] sm:$0xff]  ;;  %v336_v56 = vld [vmem:[#allocation6 + $0x10] sm:$0xff]  ;;  %p1706_p10 = scmp.ne.s32.totalorder %s1176_s1, %s1705_s21  ;;  %p1711_p12 = scmp.lt.s32.totalorder %s1705_s21, %s1705_s21 }
  0x23   :  { %67 = vmax.xlane.f32.xlu0 %v66_v7  ;;  %1351 = vmatprep.subr.mxu0 %v1735_v1  ;;  %vm1945_vm7 = vmand %vm51_vm0, %vm56_vm6 }
  0x24   :  { %1386 = vmatprep.subr.mxu1 %v1735_v1  ;;  %1352 = vmatpush3.msra.mxu0 %v1799_v11  ;;  %p1712_p13 = por %p1711_p12, %p1710_p11 }
  0x25   :  { %1387 = vmatpush3.msra.mxu1 %v1799_v11  ;;  %1353 = vmatprep.subr.mxu0 %v1735_v1 }
  0x26   :  { %1388 = vmatprep.subr.mxu1 %v1735_v1  ;;  %1354 = vmatpush3.msra.mxu0 %v1805_v12  ;;  %p1713_p0 = pnand %p1712_p13, %p1706_p10 }
  0x27   :  { %1389 = vmatpush3.msra.mxu1 %v1805_v12  ;;  %1355 = vmatprep.subr.mxu0 %v1735_v1 }
  0x28   :  { %1390 = vmatprep.subr.mxu1 %v1735_v1  ;;  %1356 = vmatpush3.msra.mxu0 %v1811_v13 }
  0x29   :  { %1391 = vmatpush3.msra.mxu1 %v1811_v13  ;;  %1357 = vmatprep.subr.mxu0 %v1735_v1 }
  0x2a   :  { %1392 = vmatprep.subr.mxu1 %v1735_v1  ;;  %1358 = vmatpush3.msra.mxu0 %v1817_v14 }
  0x2b   :  { %1393 = vmatpush3.msra.mxu1 %v1817_v14  ;;  %1359 = vmatprep.subr.mxu0 %v1735_v1 }
  0x2c   :  { %1394 = vmatprep.subr.mxu1 %v1735_v1  ;;  %1360 = vmatpush3.msra.mxu0 %v1823_v15 }
  0x2d   :  { %1395 = vmatpush3.msra.mxu1 %v1823_v15  ;;  %1361 = vmatprep.subr.mxu0 %v1735_v1 }
  0x2e   :  { %1377 = vmatprep.mubr.msk.f32.mxu0 %vm1736_vm3, %v1735_v1  ;;  %1362 = vmatpush3.msra.mxu0 %v1827_v16 }
  0x2f   :  { %1396 = vmatprep.subr.mxu1 %v1735_v1  ;;  %1363 = vmatprep.subr.mxu0 %v1735_v1 }
  0x30   :  { %1397 = vmatpush3.msra.mxu1 %v1827_v16  ;;  %1364 = vmatpush3.msra.mxu0 %v1831_v17 }
  0x31   :  { %1398 = vmatprep.subr.mxu1 %v1735_v1  ;;  %1365 = vmatprep.subr.mxu0 %v1735_v1 }
  0x32   :  { %1399 = vmatpush3.msra.mxu1 %v1831_v17  ;;  %1366 = vmatpush3.msra.mxu0 %v1838_v18 }
  0x33   :  { %1400 = vmatprep.subr.mxu1 %v1735_v1  ;;  %1367 = vmatprep.subr.mxu0 %v1735_v1 }
  0x34   :  { %1401 = vmatpush3.msra.mxu1 %v1838_v18  ;;  %1368 = vmatpush3.msra.mxu0 %v1844_v19 }
  0x35   :  { %1402 = vmatprep.subr.mxu1 %v1735_v1  ;;  %1369 = vmatprep.subr.mxu0 %v1735_v1 }
  0x36   :  { %1403 = vmatpush3.msra.mxu1 %v1844_v19  ;;  %1370 = vmatpush3.msra.mxu0 %v1850_v20 }
  0x37   :  { %1404 = vmatprep.subr.mxu1 %v1735_v1  ;;  %1371 = vmatprep.subr.mxu0 %v1735_v1 }
  0x38   :  { %1405 = vmatpush3.msra.mxu1 %v1850_v20  ;;  %1372 = vmatpush3.msra.mxu0 %v1856_v21 }
  0x39   :  { %1406 = vmatprep.subr.mxu1 %v1735_v1  ;;  %1373 = vmatprep.subr.mxu0 %v1735_v1 }
  0x3a   :  { %1407 = vmatpush3.msra.mxu1 %v1856_v21  ;;  %1374 = vmatpush3.msra.mxu0 %v1862_v22 }
  0x3b   :  { %1408 = vmatprep.subr.mxu1 %v1735_v1  ;;  %1375 = vmatprep.subr.mxu0 %v1735_v1 }
  0x3c   :  { %1409 = vmatpush3.msra.mxu1 %v1862_v22  ;;  %1376 = vmatpush3.msra.mxu0 %v1868_v23 }
  0x3d   :  { %1410 = vmatprep.subr.mxu1 %v1735_v1  ;;  %1412 = vmatprep.mubr.msk.f32.mxu1 %vm1736_vm3, %v1735_v1 }
  0x3e   :  { %1411 = vmatpush3.msra.mxu1 %v1868_v23  ;;  %1415 = vmatprep.subr.mxu0 %v1735_v1 }
  0x3f   :  { %1450 = vmatprep.subr.mxu1 %v1735_v1 }
  0xac   :  { %v68_v24 = vpop.xlane.xlu0 %67 }
  0xad   :  { %v69_v25 = vrot.slane %v68_v24, 4 }
  0xaf   :  { %v70_v26 = vmax.f32 %v68_v24, %v69_v25 }
  0xb1   :  { %v71_v27 = vrot.slane %v70_v26, 2 }
  0xb3   :  { %v72_v28 = vmax.f32 %v70_v26, %v71_v27 }
  0xb5   :  { %v73_v29 = vrot.slane %v72_v28, 1 }
  0xb7   :  { %v74_v30 = vmax.f32 %v72_v28, %v73_v29 }
  0xb9   :  { %v75_v31 = vmul.f32 0.8, %v74_v30 }
  0xbb   :  { %1633 = vtanh.f32 %v75_v31 }
  0xc8   :  { %v1634_v32 = vpop.eup %1633 }
  0xc9   :  { %v77_v33 = vmul.f32 0.3, %v1634_v32 }
  0xcb   :  { %vm78_vm4 = vcmp.gt.f32.partialorder %v1777_v6, %v77_v33 }
  0xcc   :  { %v1185_v35 = vsel %vm78_vm4, 1.0, %v1735_v1  ;;  %1378 = vmatmul.mubr.msk.f32.vlgmr.msra.gmra.mxu0 %vm78_vm4, %v1737_v36 }
  0xcd   :  { %v201_v37 = vsub.f32 1.0, %v1185_v35  ;;  %1416 = vmatpush3.msra.mxu0 %v1782_v8  ;;  %1447 = vmatprep.mubr.msk.f32.mxu0 %vm1736_vm3, %v1735_v1 }
  0xce   :  { %1417 = vmatprep.subr.mxu0 %v1735_v1 }
  0xcf   :  { %v202_v39 = vmul.f32 %v201_v37, %v199_v34  ;;  %1418 = vmatpush3.msra.mxu0 %v1787_v9 }
  0xd0   :  { %1419 = vmatprep.subr.mxu0 %v1735_v1 }
  0xd1   :  { %v203_v40 = vadd.f32 %v202_v39, %v197_v38  ;;  %1420 = vmatpush3.msra.mxu0 %v1793_v10 }
  0xd2   :  { %1421 = vmatprep.subr.mxu0 %v1735_v1 }
  0xd3   :  { %v204_v41 = vmul.f32 2.0, %v203_v40  ;;  %1422 = vmatpush3.msra.mxu0 %v1799_v11  ;;  %v338_v54 = vmul.f32 0.5, %v203_v40 }
  0xd4   :  { %1423 = vmatprep.subr.mxu0 %v1735_v1 }
  0xd5   :  { %v205_v42 = vsel %vm1770_vm2, %v204_v41, -inf  ;;  %1424 = vmatpush3.msra.mxu0 %v1805_v12 }
  0xd6   :  { %206 = vmax.xlane.f32.xlu0 %v205_v42  ;;  %1425 = vmatprep.subr.mxu0 %v1735_v1  ;;  %v475_v42 = vld [vmem:[#allocation6 + $0x18] sm:$0xff] }
  0xd7   :  { %1426 = vmatpush3.msra.mxu0 %v1811_v13 }
  0xd8   :  { %1427 = vmatprep.subr.mxu0 %v1735_v1 }
  0xd9   :  { %1428 = vmatpush3.msra.mxu0 %v1817_v14 }
  0xda   :  { %1429 = vmatprep.subr.mxu0 %v1735_v1 }
  0xdb   :  { %1430 = vmatpush3.msra.mxu0 %v1823_v15 }
  0xdc   :  { %1431 = vmatprep.subr.mxu0 %v1735_v1 }
  0xdd   :  { %1432 = vmatpush3.msra.mxu0 %v1827_v16 }
  0xde   :  { %1433 = vmatprep.subr.mxu0 %v1735_v1 }
  0xdf   :  { %1434 = vmatpush3.msra.mxu0 %v1831_v17 }
  0xe0   :  { %1435 = vmatprep.subr.mxu0 %v1735_v1 }
  0xe1   :  { %1436 = vmatpush3.msra.mxu0 %v1838_v18 }
  0xe2   :  { %1437 = vmatprep.subr.mxu0 %v1735_v1 }
  0xe3   :  { %1438 = vmatpush3.msra.mxu0 %v1844_v19 }
  0xe4   :  { %1439 = vmatprep.subr.mxu0 %v1735_v1 }
  0xe5   :  { %1440 = vmatpush3.msra.mxu0 %v1850_v20 }
  0xe6   :  { %1441 = vmatprep.subr.mxu0 %v1735_v1 }
  0xe7   :  { %1442 = vmatpush3.msra.mxu0 %v1856_v21 }
  0xe8   :  { %1443 = vmatprep.subr.mxu0 %v1735_v1 }
  0xe9   :  { %1444 = vmatpush3.msra.mxu0 %v1862_v22 }
  0xea   :  { %1445 = vmatprep.subr.mxu0 %v1735_v1 }
  0xeb   :  { %1446 = vmatpush3.msra.mxu0 %v1868_v23 }
  0xec   :  { %1485 = vmatprep.subr.mxu0 %v1735_v1 }
 0x15f   :  { %v207_v43 = vpop.xlane.xlu0 %206 }
 0x160   :  { %v208_v44 = vrot.slane %v207_v43, 4 }
 0x162   :  { %v209_v45 = vmax.f32 %v207_v43, %v208_v44 }
 0x164   :  { %v210_v46 = vrot.slane %v209_v45, 2 }
 0x166   :  { %v211_v47 = vmax.f32 %v209_v45, %v210_v46 }
 0x168   :  { %v212_v48 = vrot.slane %v211_v47, 1 }
 0x16a   :  { %v213_v49 = vmax.f32 %v211_v47, %v212_v48 }
 0x16c   :  { %v214_v50 = vmul.f32 0.8, %v213_v49 }
 0x16e   :  { %1635 = vtanh.f32 %v214_v50 }
 0x17b   :  { %v1636_v51 = vpop.eup %1635 }
 0x17c   :  { %v216_v52 = vmul.f32 0.3, %v1636_v51 }
 0x17e   :  { %vm217_vm5 = vcmp.gt.f32.partialorder %v204_v41, %v216_v52 }
 0x17f   :  { %v1188_v53 = vsel %vm217_vm5, 1.0, %v1735_v1  ;;  %1413 = vmatmul.mubr.msk.f32.vlgmr.msra.gmra.mxu1 %vm217_vm5, %v1737_v36 }
 0x180   :  { %v340_v55 = vsub.f32 1.0, %v1188_v53  ;;  %1451 = vmatpush3.msra.mxu1 %v1782_v8  ;;  %1482 = vmatprep.mubr.msk.f32.mxu1 %vm1736_vm3, %v1735_v1 }
 0x181   :  { %1452 = vmatprep.subr.mxu1 %v1735_v1 }
 0x182   :  { %v341_v57 = vmul.f32 %v340_v55, %v338_v54  ;;  %1453 = vmatpush3.msra.mxu1 %v1787_v9 }
 0x183   :  { %1454 = vmatprep.subr.mxu1 %v1735_v1 }
 0x184   :  { %v342_v58 = vadd.f32 %v341_v57, %v336_v56  ;;  %1455 = vmatpush3.msra.mxu1 %v1793_v10 }
 0x185   :  { %1456 = vmatprep.subr.mxu1 %v1735_v1 }
 0x186   :  { %v343_v59 = vmul.f32 2.0, %v342_v58  ;;  %1457 = vmatpush3.msra.mxu1 %v1799_v11  ;;  %v477_v40 = vmul.f32 0.5, %v342_v58 }
 0x187   :  { %1458 = vmatprep.subr.mxu1 %v1735_v1 }
 0x188   :  { %v344_v60 = vsel %vm1770_vm2, %v343_v59, -inf  ;;  %1459 = vmatpush3.msra.mxu1 %v1805_v12 }
 0x189   :  { %345 = vmax.xlane.f32.xlu1 %v344_v60  ;;  %1460 = vmatprep.subr.mxu1 %v1735_v1 }
 0x18a   :  { %1461 = vmatpush3.msra.mxu1 %v1811_v13 }
 0x18b   :  { %1462 = vmatprep.subr.mxu1 %v1735_v1 }
 0x18c   :  { %v1941_v61 = vpop.f32.mrf.mxu0  ;;  %1463 = vmatpush3.msra.mxu1 %v1817_v14 }
 0x18d   :  { %v1951_v63 = vmul.f32 2.0, %v1941_v61  ;;  %1464 = vmatprep.subr.mxu1 %v1735_v1  ;;  %v309_v51 = vmul.f32 0.5, %v1941_v61 }
 0x18e   :  { %v1379_v0 = vpop.f32.mrf.mxu0  ;;  %1465 = vmatpush3.msra.mxu1 %v1823_v15 }
 0x18f   :  { %v176_v3 = vsel %vm1945_vm7, %v1951_v63, -inf  ;;  %1466 = vmatprep.subr.mxu1 %v1735_v1 }
 0x190   :  { %177 = vmax.xlane.f32.xlu1 %v176_v3  ;;  %1467 = vmatpush3.msra.mxu1 %v1827_v16 }
 0x191   :  { %1468 = vmatprep.subr.mxu1 %v1735_v1 }
 0x192   :  { %1469 = vmatpush3.msra.mxu1 %v1831_v17 }
 0x193   :  { %1470 = vmatprep.subr.mxu1 %v1735_v1 }
 0x194   :  { %1471 = vmatpush3.msra.mxu1 %v1838_v18 }
 0x195   :  { %1472 = vmatprep.subr.mxu1 %v1735_v1 }
 0x196   :  { %1473 = vmatpush3.msra.mxu1 %v1844_v19 }
 0x197   :  { %1474 = vmatprep.subr.mxu1 %v1735_v1 }
 0x198   :  { %1475 = vmatpush3.msra.mxu1 %v1850_v20 }
 0x199   :  { %1476 = vmatprep.subr.mxu1 %v1735_v1 }
 0x19a   :  { %1477 = vmatpush3.msra.mxu1 %v1856_v21 }
 0x19b   :  { %1478 = vmatprep.subr.mxu1 %v1735_v1 }
 0x19c   :  { %1479 = vmatpush3.msra.mxu1 %v1862_v22 }
 0x19d   :  { %1480 = vmatprep.subr.mxu1 %v1735_v1 }
 0x19e   :  { %1481 = vmatpush3.msra.mxu1 %v1868_v23 }
 0x19f   :  { %1520 = vmatprep.subr.mxu1 %v1735_v1 }
 0x212   :  { %v346_v2 = vpop.xlane.xlu1 %345 }
 0x213   :  { %v347_v5 = vrot.slane %v346_v2, 4 }
 0x215   :  { %v348_v6 = vmax.f32 %v346_v2, %v347_v5 }
 0x217   :  { %v349_v7 = vrot.slane %v348_v6, 2 }
 0x219   :  { %v350_v24 = vmax.f32 %v348_v6, %v349_v7  ;;  %v178_v25 = vpop.xlane.xlu1 %177 }
 0x21a   :  { %v179_v26 = vrot.slane %v178_v25, 4 }
 0x21b   :  { %v351_v27 = vrot.slane %v350_v24, 1 }
 0x21c   :  { %v180_v28 = vmax.f32 %v178_v25, %v179_v26 }
 0x21d   :  { %v352_v29 = vmax.f32 %v350_v24, %v351_v27 }
 0x21e   :  { %v181_v30 = vrot.slane %v180_v28, 2 }
 0x21f   :  { %v353_v31 = vmul.f32 0.8, %v352_v29 }
 0x220   :  { %v182_v32 = vmax.f32 %v180_v28, %v181_v30 }
 0x221   :  { %1637 = vtanh.f32 %v353_v31 }
 0x222   :  { %v183_v33 = vrot.slane %v182_v32, 1 }
 0x224   :  { %v184_v34 = vmax.f32 %v182_v32, %v183_v33 }
 0x226   :  { %v185_v35 = vmul.f32 0.8, %v184_v34  ;;  %v614_v34 = vld [vmem:[#allocation6 + $0x20] sm:$0xff] }
 0x228   :  { %1639 = vtanh.f32 %v185_v35 }
 0x22e   :  { %v1638_v37 = vpop.eup %1637 }
 0x22f   :  { %v355_v38 = vmul.f32 0.3, %v1638_v37 }
 0x231   :  { %vm356_vm8 = vcmp.gt.f32.partialorder %v343_v59, %v355_v38 }
 0x232   :  { %v1191_v39 = vsel %vm356_vm8, 1.0, %v1735_v1  ;;  %1448 = vmatmul.mubr.msk.f32.vlgmr.msra.gmra.mxu0 %vm356_vm8, %v1737_v36 }
 0x233   :  { %v479_v41 = vsub.f32 1.0, %v1191_v39  ;;  %1486 = vmatpush3.msra.mxu0 %v1782_v8  ;;  %1517 = vmatprep.mubr.msk.f32.mxu0 %vm1736_vm3, %v1735_v1 }
 0x234   :  { %1487 = vmatprep.subr.mxu0 %v1735_v1 }
 0x235   :  { %v1640_v43 = vpop.eup %1639  ;;  %v480_v44 = vmul.f32 %v479_v41, %v477_v40  ;;  %1488 = vmatpush3.msra.mxu0 %v1787_v9 }
 0x236   :  { %v187_v45 = vmul.f32 0.3, %v1640_v43  ;;  %1489 = vmatprep.subr.mxu0 %v1735_v1 }
 0x237   :  { %v1983_v46 = vadd.f32 %v480_v44, %v475_v42  ;;  %1490 = vmatpush3.msra.mxu0 %v1793_v10 }
 0x238   :  { %vm188_vm9 = vcmp.gt.f32.partialorder %v1951_v63, %v187_v45  ;;  %1491 = vmatprep.subr.mxu0 %v1735_v1 }
 0x239   :  { %v482_v47 = vmul.f32 2.0, %v1983_v46  ;;  %v1990_v48 = vsel %vm188_vm9, 1.0, %v1735_v1  ;;  %1492 = vmatpush3.msra.mxu0 %v1799_v11  ;;  %v616_v32 = vmul.f32 0.5, %v1983_v46 }
 0x23a   :  { %v311_v49 = vsub.f32 1.0, %v1990_v48  ;;  %1493 = vmatprep.subr.mxu0 %v1735_v1 }
 0x23b   :  { %v483_v50 = vsel %vm1770_vm2, %v482_v47, -inf  ;;  %1494 = vmatpush3.msra.mxu0 %v1805_v12 }
 0x23c   :  { %484 = vmax.xlane.f32.xlu0 %v483_v50  ;;  %1495 = vmatprep.subr.mxu0 %v1735_v1  ;;  %v312_v52 = vmul.f32 %v311_v49, %v309_v51 }
 0x23d   :  { %1496 = vmatpush3.msra.mxu0 %v1811_v13 }
 0x23e   :  { %1497 = vmatprep.subr.mxu0 %v1735_v1 }
 0x23f   :  { %v304_v53 = vpop.f32.mrf.mxu1  ;;  %1498 = vmatpush3.msra.mxu0 %v1817_v14 }
 0x240   :  { %v2003_v54 = vadd.f32 %v312_v52, %v304_v53  ;;  %1499 = vmatprep.subr.mxu0 %v1735_v1 }
 0x241   :  { %v1414_v55 = vpop.f32.mrf.mxu1  ;;  %1500 = vmatpush3.msra.mxu0 %v1823_v15 }
 0x242   :  { %v2008_v56 = vmul.f32 2.0, %v2003_v54  ;;  %1501 = vmatprep.subr.mxu0 %v1735_v1 }
 0x243   :  { %1502 = vmatpush3.msra.mxu0 %v1827_v16 }
 0x244   :  { %v315_v57 = vsel %vm1945_vm7, %v2008_v56, -inf  ;;  %1503 = vmatprep.subr.mxu0 %v1735_v1 }
 0x245   :  { %316 = vmax.xlane.f32.xlu1 %v315_v57  ;;  %1504 = vmatpush3.msra.mxu0 %v1831_v17  ;;  %v753_v57 = vld [vmem:[#allocation6 + $0x28] sm:$0xff] }
 0x246   :  { %1505 = vmatprep.subr.mxu0 %v1735_v1 }
 0x247   :  { %1506 = vmatpush3.msra.mxu0 %v1838_v18 }
 0x248   :  { %1507 = vmatprep.subr.mxu0 %v1735_v1 }
 0x249   :  { %1508 = vmatpush3.msra.mxu0 %v1844_v19 }
 0x24a   :  { %1509 = vmatprep.subr.mxu0 %v1735_v1 }
 0x24b   :  { %1510 = vmatpush3.msra.mxu0 %v1850_v20 }
 0x24c   :  { %1511 = vmatprep.subr.mxu0 %v1735_v1 }
 0x24d   :  { %1512 = vmatpush3.msra.mxu0 %v1856_v21 }
 0x24e   :  { %1513 = vmatprep.subr.mxu0 %v1735_v1 }
 0x24f   :  { %1514 = vmatpush3.msra.mxu0 %v1862_v22 }
 0x250   :  { %1515 = vmatprep.subr.mxu0 %v1735_v1 }
 0x251   :  { %1516 = vmatpush3.msra.mxu0 %v1868_v23 }
 0x252   :  { %1555 = vmatprep.subr.mxu0 %v1735_v1 }
 0x2c5   :  { %v485_v58 = vpop.xlane.xlu0 %484 }
 0x2c6   :  { %v486_v59 = vrot.slane %v485_v58, 4 }
 0x2c8   :  { %v487_v60 = vmax.f32 %v485_v58, %v486_v59 }
 0x2ca   :  { %v488_v61 = vrot.slane %v487_v60, 2 }
 0x2cc   :  { %v489_v63 = vmax.f32 %v487_v60, %v488_v61 }
 0x2ce   :  { %v490_v0 = vrot.slane %v489_v63, 1  ;;  %v317_v3 = vpop.xlane.xlu1 %316 }
 0x2cf   :  { %v318_v2 = vrot.slane %v317_v3, 4 }
 0x2d0   :  { %v491_v5 = vmax.f32 %v489_v63, %v490_v0 }
 0x2d1   :  { %v319_v6 = vmax.f32 %v317_v3, %v318_v2 }
 0x2d2   :  { %v492_v7 = vmul.f32 0.8, %v491_v5 }
 0x2d3   :  { %v320_v24 = vrot.slane %v319_v6, 2 }
 0x2d4   :  { %1641 = vtanh.f32 %v492_v7 }
 0x2d5   :  { %v321_v25 = vmax.f32 %v319_v6, %v320_v24 }
 0x2d7   :  { %v322_v26 = vrot.slane %v321_v25, 1 }
 0x2d9   :  { %v323_v27 = vmax.f32 %v321_v25, %v322_v26 }
 0x2db   :  { %v324_v28 = vmul.f32 0.8, %v323_v27 }
 0x2dd   :  { %1643 = vtanh.f32 %v324_v28 }
 0x2e1   :  { %v1642_v29 = vpop.eup %1641 }
 0x2e2   :  { %v494_v30 = vmul.f32 0.3, %v1642_v29 }
 0x2e4   :  { %vm495_vm10 = vcmp.gt.f32.partialorder %v482_v47, %v494_v30 }
 0x2e5   :  { %v1194_v31 = vsel %vm495_vm10, 1.0, %v1735_v1  ;;  %1483 = vmatmul.mubr.msk.f32.vlgmr.msra.gmra.mxu1 %vm495_vm10, %v1737_v36 }
 0x2e6   :  { %v618_v33 = vsub.f32 1.0, %v1194_v31  ;;  %1521 = vmatpush3.msra.mxu1 %v1782_v8  ;;  %1552 = vmatprep.mubr.msk.f32.mxu1 %vm1736_vm3, %v1735_v1 }
 0x2e7   :  { %1522 = vmatprep.subr.mxu1 %v1735_v1 }
 0x2e8   :  { %v619_v35 = vmul.f32 %v618_v33, %v616_v32  ;;  %1523 = vmatpush3.msra.mxu1 %v1787_v9 }
 0x2e9   :  { %1524 = vmatprep.subr.mxu1 %v1735_v1 }
 0x2ea   :  { %v1644_v37 = vpop.eup %1643  ;;  %v2039_v38 = vadd.f32 %v619_v35, %v614_v34  ;;  %1525 = vmatpush3.msra.mxu1 %v1793_v10  ;;  %v448_v10 = vmul.f32 0.5, %v2003_v54 }
 0x2eb   :  { %v326_v39 = vmul.f32 0.3, %v1644_v37  ;;  %1526 = vmatprep.subr.mxu1 %v1735_v1 }
 0x2ec   :  { %v2044_v8 = vmul.f32 2.0, %v2039_v38  ;;  %1527 = vmatpush3.msra.mxu1 %v1799_v11  ;;  %v755_v55 = vmul.f32 0.5, %v2039_v38 }
 0x2ed   :  { %vm327_vm11 = vcmp.gt.f32.partialorder %v2008_v56, %v326_v39  ;;  %1528 = vmatprep.subr.mxu1 %v1735_v1 }
 0x2ee   :  { %v622_v9 = vsel %vm1770_vm2, %v2044_v8, -inf  ;;  %v1190_v40 = vsel %vm327_vm11, 1.0, %v1735_v1  ;;  %1529 = vmatpush3.msra.mxu1 %v1805_v12 }
 0x2ef   :  { %623 = vmax.xlane.f32.xlu0 %v622_v9  ;;  %v2056_v41 = vadd.f32 %v1190_v40, %v1990_v48  ;;  %v450_v42 = vsub.f32 1.0, %v1190_v40  ;;  %1530 = vmatprep.subr.mxu1 %v1735_v1 }
 0x2f0   :  { %1531 = vmatpush3.msra.mxu1 %v1811_v13 }
 0x2f1   :  { %v451_v11 = vmul.f32 %v450_v42, %v448_v10  ;;  %1532 = vmatprep.subr.mxu1 %v1735_v1 }
 0x2f2   :  { %v443_v43 = vpop.f32.mrf.mxu0  ;;  %1533 = vmatpush3.msra.mxu1 %v1817_v14 }
 0x2f3   :  { %v452_v44 = vadd.f32 %v451_v11, %v443_v43  ;;  %1534 = vmatprep.subr.mxu1 %v1735_v1 }
 0x2f4   :  { %v1449_v12 = vpop.f32.mrf.mxu0  ;;  %1535 = vmatpush3.msra.mxu1 %v1823_v15 }
 0x2f5   :  { %v453_v45 = vmul.f32 2.0, %v452_v44  ;;  %1536 = vmatprep.subr.mxu1 %v1735_v1  ;;  %v587_v2 = vmul.f32 0.5, %v452_v44 }
 0x2f6   :  { %1537 = vmatpush3.msra.mxu1 %v1827_v16 }
 0x2f7   :  { %v454_v13 = vsel %vm1945_vm7, %v453_v45, -inf  ;;  %1538 = vmatprep.subr.mxu1 %v1735_v1 }
 0x2f8   :  { %455 = vmax.xlane.f32.xlu1 %v454_v13  ;;  %1539 = vmatpush3.msra.mxu1 %v1831_v17  ;;  %v892_v13 = vld [vmem:[#allocation6 + $0x30] sm:$0xff] }
 0x2f9   :  { %1540 = vmatprep.subr.mxu1 %v1735_v1 }
 0x2fa   :  { %1541 = vmatpush3.msra.mxu1 %v1838_v18 }
 0x2fb   :  { %1542 = vmatprep.subr.mxu1 %v1735_v1 }
 0x2fc   :  { %1543 = vmatpush3.msra.mxu1 %v1844_v19 }
 0x2fd   :  { %1544 = vmatprep.subr.mxu1 %v1735_v1 }
 0x2fe   :  { %1545 = vmatpush3.msra.mxu1 %v1850_v20 }
 0x2ff   :  { %1546 = vmatprep.subr.mxu1 %v1735_v1 }
 0x300   :  { %1547 = vmatpush3.msra.mxu1 %v1856_v21 }
 0x301   :  { %1548 = vmatprep.subr.mxu1 %v1735_v1 }
 0x302   :  { %1549 = vmatpush3.msra.mxu1 %v1862_v22 }
 0x303   :  { %1550 = vmatprep.subr.mxu1 %v1735_v1 }
 0x304   :  { %1551 = vmatpush3.msra.mxu1 %v1868_v23 }
 0x305   :  { %1590 = vmatprep.subr.mxu1 %v1735_v1 }
 0x378   :  { %v624_v14 = vpop.xlane.xlu0 %623 }
 0x379   :  { %v625_v15 = vrot.slane %v624_v14, 4 }
 0x37b   :  { %v626_v16 = vmax.f32 %v624_v14, %v625_v15 }
 0x37d   :  { %v627_v17 = vrot.slane %v626_v16, 2 }
 0x37f   :  { %v628_v18 = vmax.f32 %v626_v16, %v627_v17 }
 0x381   :  { %v629_v19 = vrot.slane %v628_v18, 1  ;;  %v456_v20 = vpop.xlane.xlu1 %455 }
 0x382   :  { %v457_v46 = vrot.slane %v456_v20, 4 }
 0x383   :  { %v630_v47 = vmax.f32 %v628_v18, %v629_v19 }
 0x384   :  { %v458_v21 = vmax.f32 %v456_v20, %v457_v46 }
 0x385   :  { %v631_v48 = vmul.f32 0.8, %v630_v47 }
 0x386   :  { %v459_v49 = vrot.slane %v458_v21, 2 }
 0x387   :  { %1645 = vtanh.f32 %v631_v48 }
 0x388   :  { %v460_v22 = vmax.f32 %v458_v21, %v459_v49 }
 0x38a   :  { %v461_v50 = vrot.slane %v460_v22, 1 }
 0x38c   :  { %v462_v51 = vmax.f32 %v460_v22, %v461_v50 }
 0x38e   :  { %v463_v52 = vmul.f32 0.8, %v462_v51 }
 0x390   :  { %1647 = vtanh.f32 %v463_v52 }
 0x394   :  { %v1646_v23 = vpop.eup %1645 }
 0x395   :  { %v633_v53 = vmul.f32 0.3, %v1646_v23  ;;  %v932_v23 = vld [vmem:[#allocation9 + $0x78] sm:$0xff] }
 0x397   :  { %vm634_vm12 = vcmp.gt.f32.partialorder %v2044_v8, %v633_v53  ;;  %v931_v53 = vld [vmem:[#allocation9 + $0x70] sm:$0xff] }
 0x398   :  { %v1197_v54 = vsel %vm634_vm12, 1.0, %v1735_v1  ;;  %1518 = vmatmul.mubr.msk.f32.vlgmr.msra.gmra.mxu0 %vm634_vm12, %v1737_v36 }
 0x399   :  { %v757_v56 = vsub.f32 1.0, %v1197_v54  ;;  %1587 = vmatprep.mubr.msk.f32.mxu0 %vm1736_vm3, %v1735_v1  ;;  %1556 = vmatpush3.msra.mxu0 %v932_v23  ;;  %v930_v54 = vld [vmem:[#allocation9 + $0x68] sm:$0xff] }
 0x39a   :  { %1557 = vmatprep.subr.mxu0 %v1735_v1 }
 0x39b   :  { %v758_v58 = vmul.f32 %v757_v56, %v755_v55  ;;  %1558 = vmatpush3.msra.mxu0 %v931_v53  ;;  %v929_v55 = vld [vmem:[#allocation9 + $0x60] sm:$0xff]  ;;  %v928_v56 = vld [vmem:[#allocation9 + $0x58] sm:$0xff] }
 0x39c   :  { %1559 = vmatprep.subr.mxu0 %v1735_v1 }
 0x39d   :  { %v1648_v59 = vpop.eup %1647  ;;  %v759_v60 = vadd.f32 %v758_v58, %v753_v57  ;;  %1560 = vmatpush3.msra.mxu0 %v930_v54  ;;  %v927_v57 = vld [vmem:[#allocation9 + $0x50] sm:$0xff]  ;;  %v926_v58 = vld [vmem:[#allocation9 + $0x48] sm:$0xff] }
 0x39e   :  { %v465_v61 = vmul.f32 0.3, %v1648_v59  ;;  %1561 = vmatprep.subr.mxu0 %v1735_v1  ;;  %v925_v59 = vld [vmem:[#allocation9 + $0x40] sm:$0xff] }
 0x39f   :  { %v760_v63 = vmul.f32 2.0, %v759_v60  ;;  %v894_v12 = vmul.f32 0.5, %v759_v60  ;;  %1562 = vmatpush3.msra.mxu0 %v929_v55  ;;  %v924_v60 = vld [vmem:[#allocation9 + $0x38] sm:$0xff] }
 0x3a0   :  { %vm466_vm13 = vcmp.gt.f32.partialorder %v453_v45, %v465_v61  ;;  %1563 = vmatprep.subr.mxu0 %v1735_v1  ;;  %v923_v61 = vld [vmem:[#allocation9 + $0x30] sm:$0xff] }
 0x3a1   :  { %v761_v0 = vsel %vm1770_vm2, %v760_v63, -inf  ;;  %v1193_v3 = vsel %vm466_vm13, 1.0, %v1735_v1  ;;  %1564 = vmatpush3.msra.mxu0 %v928_v56 }
 0x3a2   :  { %762 = vmax.xlane.f32.xlu0 %v761_v0  ;;  %v472_v5 = vadd.f32 %v1193_v3, %v2056_v41  ;;  %v589_v6 = vsub.f32 1.0, %v1193_v3  ;;  %1565 = vmatprep.subr.mxu0 %v1735_v1  ;;  %v921_v0 = vld [vmem:[#allocation9 + $0x20] sm:$0xff]  ;;  %v920_v3 = vld [vmem:[#allocation9 + $0x18] sm:$0xff] }
 0x3a3   :  { %1566 = vmatpush3.msra.mxu0 %v927_v57 }
 0x3a4   :  { %v590_v7 = vmul.f32 %v589_v6, %v587_v2  ;;  %1567 = vmatprep.subr.mxu0 %v1735_v1  ;;  %v919_v2 = vld [vmem:[#allocation9 + $0x10] sm:$0xff]  ;;  %v917_v6 = vld [vmem:[#allocation9] sm:$0xff] }
 0x3a5   :  { %v582_v24 = vpop.f32.mrf.mxu1  ;;  %1568 = vmatpush3.msra.mxu0 %v926_v58 }
 0x3a6   :  { %v591_v25 = vadd.f32 %v590_v7, %v582_v24  ;;  %1569 = vmatprep.subr.mxu0 %v1735_v1 }
 0x3a7   :  { %v1484_v26 = vpop.f32.mrf.mxu1  ;;  %1570 = vmatpush3.msra.mxu0 %v925_v59 }
 0x3a8   :  { %v592_v27 = vmul.f32 2.0, %v591_v25  ;;  %v726_v46 = vmul.f32 0.5, %v591_v25  ;;  %1571 = vmatprep.subr.mxu0 %v1735_v1 }
 0x3a9   :  { %1572 = vmatpush3.msra.mxu0 %v924_v60 }
 0x3aa   :  { %v593_v28 = vsel %vm1945_vm7, %v592_v27, -inf  ;;  %1573 = vmatprep.subr.mxu0 %v1735_v1 }
 0x3ab   :  { %594 = vmax.xlane.f32.xlu1 %v593_v28  ;;  %1574 = vmatpush3.msra.mxu0 %v923_v61 }
 0x3ac   :  { %1575 = vmatprep.subr.mxu0 %v1735_v1 }
 0x42b   :  { %v763_v29 = vpop.xlane.xlu0 %762 }
 0x42c   :  { %v764_v30 = vrot.slane %v763_v29, 4 }
 0x42e   :  { %v765_v31 = vmax.f32 %v763_v29, %v764_v30 }
 0x430   :  { %v766_v32 = vrot.slane %v765_v31, 2 }
 0x432   :  { %v767_v33 = vmax.f32 %v765_v31, %v766_v32 }
 0x434   :  { %v768_v34 = vrot.slane %v767_v33, 1  ;;  %v595_v35 = vpop.xlane.xlu1 %594 }
 0x435   :  { %v596_v37 = vrot.slane %v595_v35, 4 }
 0x436   :  { %v769_v38 = vmax.f32 %v767_v33, %v768_v34 }
 0x437   :  { %v597_v39 = vmax.f32 %v595_v35, %v596_v37 }
 0x438   :  { %v770_v8 = vmul.f32 0.8, %v769_v38 }
 0x439   :  { %v598_v9 = vrot.slane %v597_v39, 2 }
 0x43a   :  { %1649 = vtanh.f32 %v770_v8 }
 0x43b   :  { %v599_v40 = vmax.f32 %v597_v39, %v598_v9 }
 0x43d   :  { %v600_v10 = vrot.slane %v599_v40, 1 }
 0x43f   :  { %v601_v41 = vmax.f32 %v599_v40, %v600_v10 }
 0x441   :  { %v602_v42 = vmul.f32 0.8, %v601_v41 }
 0x443   :  { %1651 = vtanh.f32 %v602_v42  ;;  %v1031_v42 = vld [vmem:[#allocation6 + $0x38] sm:$0xff] }
 0x447   :  { %v1650_v11 = vpop.eup %1649 }
 0x448   :  { %v772_v43 = vmul.f32 0.3, %v1650_v11 }
 0x44a   :  { %vm773_vm14 = vcmp.gt.f32.partialorder %v760_v63, %v772_v43  ;;  %v922_v63 = vld [vmem:[#allocation9 + $0x28] sm:$0xff] }
 0x44b   :  { %v1200_v44 = vsel %vm773_vm14, 1.0, %v1735_v1  ;;  %1553 = vmatmul.mubr.msk.f32.vlgmr.msra.gmra.mxu1 %vm773_vm14, %v1737_v36  ;;  %1576 = vmatpush3.msra.mxu0 %v922_v63 }
 0x44c   :  { %v896_v45 = vsub.f32 1.0, %v1200_v44  ;;  %1622 = vmatprep.mubr.msk.f32.mxu1 %vm1736_vm3, %v1735_v1  ;;  %1591 = vmatpush3.msra.mxu1 %v932_v23 }
 0x44d   :  { %1592 = vmatprep.subr.mxu1 %v1735_v1  ;;  %1577 = vmatprep.subr.mxu0 %v1735_v1 }
 0x44e   :  { %v897_v14 = vmul.f32 %v896_v45, %v894_v12  ;;  %1593 = vmatpush3.msra.mxu1 %v931_v53  ;;  %1578 = vmatpush3.msra.mxu0 %v921_v0 }
 0x44f   :  { %1594 = vmatprep.subr.mxu1 %v1735_v1  ;;  %1579 = vmatprep.subr.mxu0 %v1735_v1 }
 0x450   :  { %v1652_v15 = vpop.eup %1651  ;;  %v2099_v16 = vadd.f32 %v897_v14, %v892_v13  ;;  %1595 = vmatpush3.msra.mxu1 %v930_v54  ;;  %1580 = vmatpush3.msra.mxu0 %v920_v3 }
 0x451   :  { %v604_v17 = vmul.f32 0.3, %v1652_v15  ;;  %1596 = vmatprep.subr.mxu1 %v1735_v1  ;;  %1581 = vmatprep.subr.mxu0 %v1735_v1 }
 0x452   :  { %v2102_v18 = vmul.f32 2.0, %v2099_v16  ;;  %1597 = vmatpush3.msra.mxu1 %v929_v55  ;;  %1582 = vmatpush3.msra.mxu0 %v919_v2  ;;  %v1033_v10 = vmul.f32 0.5, %v2099_v16 }
 0x453   :  { %vm605_vm15 = vcmp.gt.f32.partialorder %v592_v27, %v604_v17  ;;  %1598 = vmatprep.subr.mxu1 %v1735_v1  ;;  %1583 = vmatprep.subr.mxu0 %v1735_v1 }
 0x454   :  { %v900_v19 = vsel %vm1770_vm2, %v2102_v18, -inf  ;;  %v1196_v20 = vsel %vm605_vm15, 1.0, %v1735_v1  ;;  %1599 = vmatpush3.msra.mxu1 %v928_v56 }
 0x455   :  { %901 = vmax.xlane.f32.xlu0 %v900_v19  ;;  %v2108_v47 = vadd.f32 %v1196_v20, %v472_v5  ;;  %v728_v21 = vsub.f32 1.0, %v1196_v20  ;;  %1600 = vmatprep.subr.mxu1 %v1735_v1  ;;  %v918_v5 = vld [vmem:[#allocation9 + $0x8] sm:$0xff] }
 0x456   :  { %1601 = vmatpush3.msra.mxu1 %v927_v57  ;;  %1584 = vmatpush3.msra.mxu0 %v918_v5 }
 0x457   :  { %v729_v48 = vmul.f32 %v728_v21, %v726_v46  ;;  %1602 = vmatprep.subr.mxu1 %v1735_v1  ;;  %1585 = vmatprep.subr.mxu0 %v1735_v1 }
 0x458   :  { %v721_v49 = vpop.f32.mrf.mxu0  ;;  %1603 = vmatpush3.msra.mxu1 %v926_v58  ;;  %1586 = vmatpush3.msra.mxu0 %v917_v6 }
 0x459   :  { %v2110_v22 = vadd.f32 %v729_v48, %v721_v49  ;;  %1604 = vmatprep.subr.mxu1 %v1735_v1 }
 0x45a   :  { %v1519_v50 = vpop.f32.mrf.mxu0  ;;  %1605 = vmatpush3.msra.mxu1 %v925_v59 }
 0x45b   :  { %v2113_v51 = vmul.f32 2.0, %v2110_v22  ;;  %1606 = vmatprep.subr.mxu1 %v1735_v1  ;;  %v865_v15 = vmul.f32 0.5, %v2110_v22 }
 0x45c   :  { %1607 = vmatpush3.msra.mxu1 %v924_v60 }
 0x45d   :  { %v732_v52 = vsel %vm1945_vm7, %v2113_v51, -inf  ;;  %1608 = vmatprep.subr.mxu1 %v1735_v1 }
 0x45e   :  { %733 = vmax.xlane.f32.xlu1 %v732_v52  ;;  %1609 = vmatpush3.msra.mxu1 %v923_v61 }
 0x45f   :  { %1610 = vmatprep.subr.mxu1 %v1735_v1 }
 0x460   :  { %1611 = vmatpush3.msra.mxu1 %v922_v63 }
 0x461   :  { %1612 = vmatprep.subr.mxu1 %v1735_v1 }
 0x462   :  { %1613 = vmatpush3.msra.mxu1 %v921_v0 }
 0x463   :  { %1614 = vmatprep.subr.mxu1 %v1735_v1 }
 0x464   :  { %1615 = vmatpush3.msra.mxu1 %v920_v3 }
 0x465   :  { %1616 = vmatprep.subr.mxu1 %v1735_v1 }
 0x466   :  { %1617 = vmatpush3.msra.mxu1 %v919_v2 }
 0x467   :  { %1618 = vmatprep.subr.mxu1 %v1735_v1 }
 0x468   :  { %1619 = vmatpush3.msra.mxu1 %v918_v5 }
 0x469   :  { %1620 = vmatprep.subr.mxu1 %v1735_v1 }
 0x46a   :  { %1621 = vmatpush3.msra.mxu1 %v917_v6 }
 0x4de   :  { %v902_v7 = vpop.xlane.xlu0 %901 }
 0x4df   :  { %v903_v24 = vrot.slane %v902_v7, 4 }
 0x4e1   :  { %v904_v25 = vmax.f32 %v902_v7, %v903_v24 }
 0x4e3   :  { %v905_v26 = vrot.slane %v904_v25, 2 }
 0x4e5   :  { %v906_v27 = vmax.f32 %v904_v25, %v905_v26 }
 0x4e7   :  { %v907_v28 = vrot.slane %v906_v27, 1  ;;  %v734_v29 = vpop.xlane.xlu1 %733 }
 0x4e8   :  { %v735_v30 = vrot.slane %v734_v29, 4 }
 0x4e9   :  { %v908_v31 = vmax.f32 %v906_v27, %v907_v28 }
 0x4ea   :  { %v736_v32 = vmax.f32 %v734_v29, %v735_v30 }
 0x4eb   :  { %v909_v33 = vmul.f32 0.8, %v908_v31 }
 0x4ec   :  { %v737_v34 = vrot.slane %v736_v32, 2 }
 0x4ed   :  { %1653 = vtanh.f32 %v909_v33 }
 0x4ee   :  { %v738_v35 = vmax.f32 %v736_v32, %v737_v34 }
 0x4f0   :  { %v739_v37 = vrot.slane %v738_v35, 1 }
 0x4f2   :  { %v740_v38 = vmax.f32 %v738_v35, %v739_v37 }
 0x4f4   :  { %v741_v39 = vmul.f32 0.8, %v740_v38 }
 0x4f6   :  { %1655 = vtanh.f32 %v741_v39 }
 0x4fa   :  { %v1654_v8 = vpop.eup %1653 }
 0x4fb   :  { %v911_v9 = vmul.f32 0.3, %v1654_v8 }
 0x4fd   :  { %vm912_vm0 = vcmp.gt.f32.partialorder %v2102_v18, %v911_v9 }
 0x4fe   :  { %v1203_v40 = vsel %vm912_vm0, 1.0, %v1735_v1  ;;  %1588 = vmatmul.mubr.msk.f32.vlgmr.msra.gmra.mxu0 %vm912_vm0, %v1737_v36 }
 0x4ff   :  { %v1035_v41 = vsub.f32 1.0, %v1203_v40 }
 0x501   :  { %v1036_v11 = vmul.f32 %v1035_v41, %v1033_v10 }
 0x503   :  { %v1656_v43 = vpop.eup %1655  ;;  %v1037_v44 = vadd.f32 %v1036_v11, %v1031_v42 }
 0x504   :  { %v743_v12 = vmul.f32 0.3, %v1656_v43 }
 0x505   :  { %v1038_v45 = vmul.f32 2.0, %v1037_v44 }
 0x506   :  { %vm744_vm1 = vcmp.gt.f32.partialorder %v2113_v51, %v743_v12 }
 0x507   :  { %v1039_v13 = vsel %vm1770_vm2, %v1038_v45, -inf  ;;  %v1199_v14 = vsel %vm744_vm1, 1.0, %v1735_v1 }
 0x508   :  { %1040 = vmax.xlane.f32.xlu0 %v1039_v13  ;;  %v750_v17 = vadd.f32 %v1199_v14, %v2108_v47  ;;  %v867_v16 = vsub.f32 1.0, %v1199_v14 }
 0x50a   :  { %v868_v18 = vmul.f32 %v867_v16, %v865_v15 }
 0x50b   :  { %v860_v19 = vpop.f32.mrf.mxu1 }
 0x50c   :  { %v869_v20 = vadd.f32 %v868_v18, %v860_v19 }
 0x50d   :  { %v1554_v46 = vpop.f32.mrf.mxu1 }
 0x50e   :  { %v870_v21 = vmul.f32 2.0, %v869_v20  ;;  %v1004_v5 = vmul.f32 0.5, %v869_v20 }
 0x510   :  { %v871_v48 = vsel %vm1945_vm7, %v870_v21, -inf }
 0x511   :  { %872 = vmax.xlane.f32.xlu1 %v871_v48 }
 0x591   :  { %v1041_v49 = vpop.xlane.xlu0 %1040 }
 0x592   :  { %v1042_v4 = vrot.slane %v1041_v49, 4 }
 0x594   :  { %v1043_v50 = vmax.f32 %v1041_v49, %v1042_v4 }
 0x596   :  { %v1044_v51 = vrot.slane %v1043_v50, 2 }
 0x598   :  { %v1045_v52 = vmax.f32 %v1043_v50, %v1044_v51 }
 0x59a   :  { %v1046_v23 = vrot.slane %v1045_v52, 1  ;;  %v873_v22 = vpop.xlane.xlu1 %872 }
 0x59b   :  { %v874_v53 = vrot.slane %v873_v22, 4 }
 0x59c   :  { %v1047_v54 = vmax.f32 %v1045_v52, %v1046_v23 }
 0x59d   :  { %v875_v47 = vmax.f32 %v873_v22, %v874_v53 }
 0x59e   :  { %v1048_v55 = vmul.f32 0.8, %v1047_v54 }
 0x59f   :  { %v876_v56 = vrot.slane %v875_v47, 2 }
 0x5a0   :  { %1657 = vtanh.f32 %v1048_v55 }
 0x5a1   :  { %v877_v57 = vmax.f32 %v875_v47, %v876_v56 }
 0x5a3   :  { %v878_v58 = vrot.slane %v877_v57, 1 }
 0x5a5   :  { %v879_v59 = vmax.f32 %v877_v57, %v878_v58 }
 0x5a7   :  { %v880_v60 = vmul.f32 0.8, %v879_v59 }
 0x5a9   :  { %1659 = vtanh.f32 %v880_v60 }
 0x5ad   :  { %v1658_v61 = vpop.eup %1657 }
 0x5ae   :  { %v1050_v63 = vmul.f32 0.3, %v1658_v61 }
 0x5b0   :  { %vm1051_vm2 = vcmp.gt.f32.partialorder %v1038_v45, %v1050_v63 }
 0x5b1   :  { %1623 = vmatmul.mubr.msk.f32.vlgmr.msra.gmra.mxu1 %vm1051_vm2, %v1737_v36 }
 0x5b6   :  { %v1660_v0 = vpop.eup %1659 }
 0x5b7   :  { %v882_v3 = vmul.f32 0.3, %v1660_v0 }
 0x5b9   :  { %vm883_vm3 = vcmp.gt.f32.partialorder %v870_v21, %v882_v3 }
 0x5ba   :  { %v1202_v2 = vsel %vm883_vm3, 1.0, %v1735_v1 }
 0x5bb   :  { %v889_v6 = vadd.f32 %v1202_v2, %v750_v17  ;;  %v1006_v7 = vsub.f32 1.0, %v1202_v2 }
 0x5bd   :  { %v1007_v24 = vmul.f32 %v1006_v7, %v1004_v5 }
 0x5be   :  { %v999_v25 = vpop.f32.mrf.mxu0 }
 0x5bf   :  { %v1008_v26 = vadd.f32 %v1007_v24, %v999_v25 }
 0x5c0   :  { %v1589_v27 = vpop.f32.mrf.mxu0 }
 0x5c1   :  { %v1009_v28 = vmul.f32 2.0, %v1008_v26  ;;  %v1143_v9 = vmul.f32 0.5, %v1008_v26 }
 0x5c3   :  { %v1010_v29 = vsel %vm1945_vm7, %v1009_v28, -inf }
 0x5c4   :  { %1011 = vmax.xlane.f32.xlu0 %v1010_v29 }
 0x64d   :  { %v1012_v30 = vpop.xlane.xlu0 %1011 }
 0x64e   :  { %v1013_v31 = vrot.slane %v1012_v30, 4 }
 0x650   :  { %v1014_v36 = vmax.f32 %v1012_v30, %v1013_v31 }
 0x652   :  { %v1015_v32 = vrot.slane %v1014_v36, 2 }
 0x654   :  { %v1016_v33 = vmax.f32 %v1014_v36, %v1015_v32 }
 0x656   :  { %v1017_v34 = vrot.slane %v1016_v33, 1 }
 0x658   :  { %v1018_v35 = vmax.f32 %v1016_v33, %v1017_v34 }
 0x65a   :  { %v1019_v37 = vmul.f32 0.8, %v1018_v35 }
 0x65c   :  { %1661 = vtanh.f32 %v1019_v37 }
 0x669   :  { %v1662_v38 = vpop.eup %1661 }
 0x66a   :  { %v1021_v39 = vmul.f32 0.3, %v1662_v38 }
 0x66c   :  { %vm1022_vm4 = vcmp.gt.f32.partialorder %v1009_v28, %v1021_v39 }
 0x66d   :  { %v1205_v8 = vsel %vm1022_vm4, 1.0, %v1735_v1 }
 0x66e   :  { %v1028_v40 = vadd.f32 %v1205_v8, %v889_v6  ;;  %v1145_v10 = vsub.f32 1.0, %v1205_v8 }
 0x670   :  { %v1146_v41 = vmul.f32 %v1145_v10, %v1143_v9 }
 0x671   :  { %v1138_v42 = vpop.f32.mrf.mxu1 }
 0x672   :  { %v1147_v11 = vadd.f32 %v1146_v41, %v1138_v42 }
 0x673   :  { %v1624_v43 = vpop.f32.mrf.mxu1 }
 0x674   :  { %v1148_v44 = vmul.f32 2.0, %v1147_v11 }
 0x676   :  { %v1149_v12 = vsel %vm1945_vm7, %v1148_v44, -inf }
 0x677   :  { %1150 = vmax.xlane.f32.xlu1 %v1149_v12 }
 0x700   :  { %v1151_v45 = vpop.xlane.xlu1 %1150 }
 0x701   :  { %v1152_v13 = vrot.slane %v1151_v45, 4 }
 0x703   :  { %v1153_v14 = vmax.f32 %v1151_v45, %v1152_v13 }
 0x705   :  { %v1154_v15 = vrot.slane %v1153_v14, 2 }
 0x707   :  { %v1155_v17 = vmax.f32 %v1153_v14, %v1154_v15 }
 0x709   :  { %v1156_v16 = vrot.slane %v1155_v17, 1 }
 0x70b   :  { %v1157_v18 = vmax.f32 %v1155_v17, %v1156_v16 }
 0x70d   :  { %v1158_v19 = vmul.f32 0.8, %v1157_v18 }
 0x70f   :  { %1663 = vtanh.f32 %v1158_v19 }
 0x71c   :  { %v1664_v20 = vpop.eup %1663 }
 0x71d   :  { %v1160_v46 = vmul.f32 0.3, %v1664_v20 }
 0x71f   :  { %vm1161_vm5 = vcmp.gt.f32.partialorder %v1148_v44, %v1160_v46 }
 0x720   :  { %v1208_v21 = vsel %vm1161_vm5, 1.0, %v1735_v1 }
 0x721   :  { %v1167_v48 = vadd.f32 %v1208_v21, %v1028_v40 }
 0x723   :  { %1168 = vst [vmem:[#allocation11] sm:$0xff] %v1167_v48 }
 0x724   :  { %1716 = shalt.err (!%p1713_p0)
}
 0x725   :  { %1178 = dma.vmem_to_hbm [thread:$0]  %s1176_s1, 128, %s2173_s2, [#allocation8]  }
 0x726   :  { %1729 = dma.done.wait [#allocation8], 128  }
 0x727   :  { %1730 = vsyncadd [#allocation8], 4294967168 }
 0x728   :  { %1182 = vsyncpa [#allocation7], 1 }
 0x729   :  { %1183 = vsyncpa [#allocation10], 1 }
 0x72a   :  { %1184 = vsyncpa [#allocation8], 1 }

</bundles_post_ra>
